<compile_context>
chip_gen: v7x
topology: tpu7x:2x2x1
jax: 0.10.0
libtpu: 0.0.40
codegen_flags: <defaults>
</compile_context>

<pallas_src>
import jax
import jax.numpy as jnp
from jax.experimental import pallas as pl
from jax.experimental.pallas import tpu as pltpu

F32 = jnp.float32

# ---- hyperparameters (small, consistent with the module's __init__) ----
NUM_GPNN_LAYERS = 2
GPNN_CHANNELS = 16          # G
NUM_CLASSES = 3             # C
BASE_GNN_LAYERS = 2
BASE_GNN_IN_CHANNELS = 4
BASE_GNN_HIDDEN = 16        # H
OUT_CHANNELS = 8
V = 8                       # vertices in the batch
B = 2                       # graphs in the batch


# ----------------------------------------------------------------------------
# Fused forward kernel.
#   alphaJ layout: alphaJ[j, v*G + f] = alpha[v, j, f]   (lane-dense (V, V*G) slab)
#   dmask[w, v*G + f]   = 1 if w == v                     (diagonal-block mask)
#   blkeye[a, b]        = 1 if a % G == b % G             (block "identity tiler")
#   ewbd[l, i]          = kron(I_V, edge_mlp_w_i)         (block-diag edge MLP weights)
#   omega is folded into wb_all / wa_tile / deg_u.
# ----------------------------------------------------------------------------
def gpnn_fused_kernel(adj_ref, cadj_ref, gamma0_ref, alphaJ0_ref, x0_ref, pool_ref,
                      degu_ref, dmask_ref, blkeye_ref,
                      vw_ref, vb_ref, ewbd_ref, ebt_ref, wball_ref, watile_ref,
                      gw_ref, gb_ref, pw1_ref, pb1_ref, pw2_ref, pb2_ref,
                      out_ref):
    G = GPNN_CHANNELS
    adj = adj_ref[...]            # (V, V)   adj[t, s] = 1 iff edge s->t (aggregation matrix)
    pool = pool_ref[...]          # (B, V)
    dmask = dmask_ref[...]        # (V, V*G)
    blkeye = blkeye_ref[...]      # (V*G, V*G)
    degu = degu_ref[...]          # (V, G)   sum_c deg_c[v] * omega_c * (u_c @ Wu_c)
    wb_all = wball_ref[...]       # (G, C*G) hstack_c omega_c * Wb_c

    gamma = gamma0_ref[...]       # (V, G)  (col 0 = labels, rest zero-padded)
    alphaJ = alphaJ0_ref[...]     # (V, V*G)

    gpnn_pools = []
    for l in range(NUM_GPNN_LAYERS):
        # ---- vertex GIN:  beta = MLP(adj_in @ gamma + (1 + eps) * gamma),  eps = 0
        hv = jnp.dot(adj, gamma, preferred_element_type=F32) + gamma
        hv = jnp.maximum(jnp.dot(hv, vw_ref[l, 0], preferred_element_type=F32) + vb_ref[l, 0], 0.0)
        beta = jnp.dot(hv, vw_ref[l, 1], preferred_element_type=F32) + vb_ref[l, 1]      # (V, G)

        # ---- edge conv, lane-dense (V, V*G) layout
        # t1T[w, v*G+f] = sum_j adj[w, j] * alpha[v, j, f]
        t1T = jnp.dot(adj, alphaJ, preferred_element_type=F32)                            # (V, V*G)
        # term2[w, f] = t1T[w, w*G+f] (the "self" aggregation); the masked matmul below
        # both extracts the diagonal block and re-tiles it across every v block.
        term2 = jnp.dot(t1T * dmask, blkeye, preferred_element_type=F32)                  # (V, V*G)
        he = t1T + term2 + alphaJ                                                         # (1+eps)=1
        # per-(v,w) MLP applied to all V*V edges via block-diagonal weights
        he = jnp.maximum(
            jnp.dot(he, ewbd_ref[l, 0], preferred_element_type=F32) + ebt_ref[l, 0], 0.0)
        alphaJ = jnp.dot(he, ewbd_ref[l, 1], preferred_element_type=F32) + ebt_ref[l, 1]  # (V, V*G)

        # ---- gamma update: gamma = sum_c omega_c*(Ac@(beta@Wb_c) + Mc@Wa_c + deg_c*u_row_c)
        betaWb = jnp.dot(beta, wb_all, preferred_element_type=F32)                        # (V, C*G)
        gamma = degu
        for c in range(NUM_CLASSES):
            Ac = cadj_ref[c]                                                              # (V, V)
            tb = jnp.dot(Ac, betaWb[:, c * G:(c + 1) * G], preferred_element_type=F32)
            # Mc[v, f] = sum_j Ac[v, j] * alpha[v, j, f]; realised as a masked lane-dense
            # matmul against the vertically tiled Wa_c (omega folded in).
            pc = jnp.dot(Ac, alphaJ, preferred_element_type=F32)                          # (V, V*G)
            ta = jnp.dot(pc * dmask, watile_ref[c], preferred_element_type=F32)           # (V, G)
            gamma = gamma + tb + ta
        gpnn_pools.append(jnp.dot(pool, gamma, preferred_element_type=F32))               # (B, G)

    # ---- base GIN branch (eps = 0)
    xx = x0_ref[...]                                                                      # (V, H)
    gnn_pools = []
    for t in range(BASE_GNN_LAYERS):
        hx = jnp.dot(adj, xx, preferred_element_type=F32) + xx
        hx = jnp.maximum(jnp.dot(hx, gw_ref[t, 0], preferred_element_type=F32) + gb_ref[t, 0], 0.0)
        xx = jnp.dot(hx, gw_ref[t, 1], preferred_element_type=F32) + gb_ref[t, 1]
        gnn_pools.append(jnp.dot(pool, xx, preferred_element_type=F32))                   # (B, H)

    # ---- pool MLP on concat([gnn pools..., gpnn pools...]); the concat is expressed as
    # a sum of row-sliced matmuls against pw1 (avoids any in-kernel concatenation).
    pw1 = pw1_ref[...]
    pieces = gnn_pools + gpnn_pools
    f1 = pb1_ref[...]
    off = 0
    for p in pieces:
        w = p.shape[1]
        f1 = f1 + jnp.dot(p, pw1[off:off + w, :], preferred_element_type=F32)
        off += w
    f1 = jnp.maximum(f1, 0.0)
    out_ref[...] = jnp.dot(f1, pw2_ref[...], preferred_element_type=F32) + pb2_ref[...]


# ----------------------------------------------------------------------------
# Parameter initialization (deterministic, glorot-uniform) -- logical params
# mirroring the PyTorch module structure.
# ----------------------------------------------------------------------------
def glorot(key, shape):
    scale = jnp.sqrt(6.0 / (shape[0] + shape[1]))
    return jax.random.uniform(key, shape, F32, -scale, scale)


def init_params(key):
    keys = iter(jax.random.split(key, 64))
    params = {}
    in_ch = 1
    vertex, edge = [], []
    for _ in range(NUM_GPNN_LAYERS):
        vertex.append(dict(
            w1=glorot(next(keys), (in_ch, GPNN_CHANNELS)), b1=jnp.zeros((1, GPNN_CHANNELS), F32),
            w2=glorot(next(keys), (GPNN_CHANNELS, GPNN_CHANNELS)),
            b2=jnp.zeros((1, GPNN_CHANNELS), F32)))
        edge.append(dict(
            w1=glorot(next(keys), (in_ch, GPNN_CHANNELS)), b1=jnp.zeros((1, GPNN_CHANNELS), F32),
            w2=glorot(next(keys), (GPNN_CHANNELS, GPNN_CHANNELS)),
            b2=jnp.zeros((1, GPNN_CHANNELS), F32)))
        in_ch = GPNN_CHANNELS
    params['vertex'] = vertex
    params['edge'] = edge
    params['W'] = jnp.stack([glorot(next(keys), (2 * GPNN_CHANNELS + NUM_CLASSES, GPNN_CHANNELS))
                             for _ in range(NUM_CLASSES)])
    params['omega'] = jax.random.normal(next(keys), (NUM_CLASSES, 1), F32)

    # base GIN layers; the reference zero-pads x to hidden width, so layer-0 weight
    # rows beyond BASE_GNN_IN_CHANNELS are zero (equivalent to the unpadded Linear).
    gnn = []
    w1_0 = jnp.zeros((BASE_GNN_HIDDEN, BASE_GNN_HIDDEN), F32)
    w1_0 = w1_0.at[:BASE_GNN_IN_CHANNELS, :].set(
        glorot(next(keys), (BASE_GNN_IN_CHANNELS, BASE_GNN_HIDDEN)))
    gnn.append(dict(w1=w1_0, b1=jnp.zeros((1, BASE_GNN_HIDDEN), F32),
                    w2=glorot(next(keys), (BASE_GNN_HIDDEN, BASE_GNN_HIDDEN)),
                    b2=jnp.zeros((1, BASE_GNN_HIDDEN), F32)))
    for _ in range(1, BASE_GNN_LAYERS):
        gnn.append(dict(w1=glorot(next(keys), (BASE_GNN_HIDDEN, BASE_GNN_HIDDEN)),
                        b1=jnp.zeros((1, BASE_GNN_HIDDEN), F32),
                        w2=glorot(next(keys), (BASE_GNN_HIDDEN, BASE_GNN_HIDDEN)),
                        b2=jnp.zeros((1, BASE_GNN_HIDDEN), F32)))
    params['gnn'] = gnn

    din = BASE_GNN_HIDDEN * BASE_GNN_LAYERS + NUM_GPNN_LAYERS * GPNN_CHANNELS
    dhid = GPNN_CHANNELS + BASE_GNN_HIDDEN
    params['pool'] = dict(w1=glorot(next(keys), (din, dhid)), b1=jnp.zeros((1, dhid), F32),
                          w2=glorot(next(keys), (dhid, OUT_CHANNELS)),
                          b2=jnp.zeros((1, OUT_CHANNELS), F32))
    return params


# ----------------------------------------------------------------------------
# One-time host-side packing for the fused kernel (padding, kron block-diag,
# omega folding, bias tiling).
# ----------------------------------------------------------------------------
def pack_params(params):
    G, C, Vn = GPNN_CHANNELS, NUM_CLASSES, V
    L, T = NUM_GPNN_LAYERS, BASE_GNN_LAYERS
    eye_v = jnp.eye(Vn, dtype=F32)

    def pad_rows(w, rows):
        return jnp.zeros((rows, w.shape[1]), F32).at[:w.shape[0], :].set(w)

    vw = jnp.stack([jnp.stack([pad_rows(params['vertex'][l]['w1'], G),
                               params['vertex'][l]['w2']]) for l in range(L)])            # (L,2,G,G)
    vb = jnp.stack([jnp.stack([params['vertex'][l]['b1'],
                               params['vertex'][l]['b2']]) for l in range(L)])            # (L,2,1,G)
    ewbd = jnp.stack([jnp.stack([jnp.kron(eye_v, pad_rows(params['edge'][l]['w1'], G)),
                                 jnp.kron(eye_v, params['edge'][l]['w2'])])
                      for l in range(L)])                                                 # (L,2,V*G,V*G)
    ebt = jnp.stack([jnp.stack([jnp.tile(params['edge'][l]['b1'], (1, Vn)),
                                jnp.tile(params['edge'][l]['b2'], (1, Vn))])
                     for l in range(L)])                                                  # (L,2,1,V*G)

    Wst, omega = params['W'], params['omega']                                             # (C,2G+C,G),(C,1)
    wb_all = jnp.concatenate([omega[c, 0] * Wst[c, :G, :] for c in range(C)], axis=1)     # (G, C*G)
    wa_tile = jnp.stack([jnp.tile(omega[c, 0] * Wst[c, G:2 * G, :], (Vn, 1))
                         for c in range(C)])                                              # (C, V*G, G)
    u_rows = jnp.stack([omega[c, 0] * Wst[c, 2 * G + c, :] for c in range(C)])            # (C, G)

    gw = jnp.stack([jnp.stack([params['gnn'][t]['w1'], params['gnn'][t]['w2']]) for t in range(T)])
    gb = jnp.stack([jnp.stack([params['gnn'][t]['b1'], params['gnn'][t]['b2']]) for t in range(T)])

    pp = params['pool']
    return dict(vw=vw, vb=vb, ewbd=ewbd, ebt=ebt, wb_all=wb_all, wa_tile=wa_tile,
                u_rows=u_rows, gw=gw, gb=gb,
                pw1=pp['w1'], pb1=pp['b1'], pw2=pp['w2'], pb2=pp['b2'])


# ----------------------------------------------------------------------------
# alpha initialization (deterministic replacement for Python hash())
# ----------------------------------------------------------------------------
def init_alpha(labels, adj_dir):
    # TODO(synk): reference uses hash((class_v, rel, class_w)); not reproducible in
    # JAX, replaced with a deterministic integer encoding in [0, 1).
    cv = labels[:, None]
    cw = labels[None, :]
    edge = adj_dir.T > 0              # entry [v, w]: edge w->v exists
    rel = jnp.where(edge & (cv == cw), 0, jnp.where(edge & (cv != cw), 1, 2))
    code = (cv * 7919 + rel * 104729 + cw * 1299709) % 997
    return code.astype(F32) / 997.0   # (V, V)


# ----------------------------------------------------------------------------
# Wrapper: cheap graph preprocessing + the single fused pallas_call
# ----------------------------------------------------------------------------
def gpnn_forward(packed, x_feat, labels, adj_dir, pool_mat):
    G, C, Vn, H = GPNN_CHANNELS, NUM_CLASSES, V, BASE_GNN_HIDDEN
    adj_in = adj_dir.T.astype(F32)                                    # adj_in[t, s] = edge s->t
    # class adjacencies: Ac[i, j] = adj[i, j] * (label[j] == c)
    cadj = jnp.stack([adj_dir.astype(F32) * (labels[None, :] == c).astype(F32)
                      for c in range(C)])                             # (C, V, V)
    deg = jnp.sum(cadj, axis=2)                                       # (C, V)
    deg_u = jnp.dot(deg.T, packed['u_rows'])                          # (V, G), omega folded in

    gamma0 = jnp.zeros((Vn, G), F32).at[:, 0].set(labels.astype(F32))
    code = init_alpha(labels, adj_dir)                                # (V, V), code[v, w]
    # alphaJ0[j, v*G + f] = alpha0[v, j, f]  (only f == 0 is nonzero initially)
    alphaJ0 = jnp.zeros((Vn, Vn, G), F32).at[:, :, 0].set(code.T).reshape(Vn, Vn * G)
    x0 = jnp.concatenate([x_feat.astype(F32),
                          jnp.zeros((Vn, H - BASE_GNN_IN_CHANNELS), F32)], axis=1)

    vblk = jnp.arange(Vn * G, dtype=jnp.int32) // G
    dmask = (jnp.arange(Vn, dtype=jnp.int32)[:, None] == vblk[None, :]).astype(F32)   # (V, V*G)
    lane_f = jnp.arange(Vn * G, dtype=jnp.int32) % G
    blkeye = (lane_f[:, None] == lane_f[None, :]).astype(F32)                         # (V*G, V*G)

    kernel_inputs = (adj_in, cadj, gamma0, alphaJ0, x0, pool_mat.astype(F32), deg_u, dmask, blkeye,
                     packed['vw'], packed['vb'], packed['ewbd'], packed['ebt'],
                     packed['wb_all'], packed['wa_tile'], packed['gw'], packed['gb'],
                     packed['pw1'], packed['pb1'], packed['pw2'], packed['pb2'])
    return pl.pallas_call(
        gpnn_fused_kernel,
        out_shape=jax.ShapeDtypeStruct((pool_mat.shape[0], OUT_CHANNELS), F32),
        in_specs=[pl.BlockSpec(memory_space=pltpu.MemorySpace.VMEM) for _ in kernel_inputs],
        out_specs=pl.BlockSpec(memory_space=pltpu.MemorySpace.VMEM),
    )(*kernel_inputs)


# ----------------------------------------------------------------------------
# Pure-JAX reference (unfused, 3-D alpha, unpadded/unfolded params) for checking
# ----------------------------------------------------------------------------
def reference_forward(params, x_feat, labels, adj_dir, pool_mat):
    G, C, Vn = GPNN_CHANNELS, NUM_CLASSES, V
    adj_in = adj_dir.T.astype(F32)
    cadj = [adj_dir.astype(F32) * (labels[None, :] == c).astype(F32) for c in range(C)]
    gamma = labels.astype(F32)[:, None]
    alpha = init_alpha(labels, adj_dir)[:, :, None]                   # (V, V, 1)

    def mlp(h, p):
        return jnp.dot(jnp.maximum(jnp.dot(h, p['w1']) + p['b1'], 0.0), p['w2']) + p['b2']

    gpnn_pools = []
    for l in range(NUM_GPNN_LAYERS):
        pv, pe = params['vertex'][l], params['edge'][l]
        beta = mlp(jnp.dot(adj_in, gamma) + gamma, pv)
        t1 = jnp.einsum('wj,vjf->vwf', adj_in, alpha)
        term2 = jnp.stack([t1[v, v, :] for v in range(Vn)])           # (V, F)
        h = t1 + term2[None, :, :] + alpha
        alpha = mlp(h.reshape(Vn * Vn, -1), pe).reshape(Vn, Vn, G)
        new_gamma = jnp.zeros((Vn, G), F32)
        for c in range(C):
            Ac, Wc = cadj[c], params['W'][c]
            tb = jnp.dot(Ac, jnp.dot(beta, Wc[:G]))
            Mc = jnp.einsum('vj,vjf->vf', Ac, alpha)
            ta = jnp.dot(Mc, Wc[G:2 * G])
            deg = jnp.sum(Ac, axis=1, keepdims=True)
            new_gamma = new_gamma + params['omega'][c, 0] * (tb + ta + deg * Wc[2 * G + c][None, :])
        gamma = new_gamma
        gpnn_pools.append(jnp.dot(pool_mat, gamma))

    xx = jnp.concatenate([x_feat.astype(F32),
                          jnp.zeros((Vn, BASE_GNN_HIDDEN - BASE_GNN_IN_CHANNELS), F32)], axis=1)
    gnn_pools = []
    for t in range(BASE_GNN_LAYERS):
        xx = mlp(jnp.dot(adj_in, xx) + xx, params['gnn'][t])
        gnn_pools.append(jnp.dot(pool_mat, xx))

    feat = jnp.concatenate(gnn_pools + gpnn_pools, axis=1)
    pp = params['pool']
    return jnp.dot(jnp.maximum(jnp.dot(feat, pp['w1']) + pp['b1'], 0.0), pp['w2']) + pp['b2']


if __name__ == "__main__":
    key = jax.random.PRNGKey(0)
    kp, kx, kl, ka = jax.random.split(key, 4)
    params = init_params(kp)
    packed = pack_params(params)

    x_feat = jax.random.normal(kx, (V, BASE_GNN_IN_CHANNELS), F32)        # data.x[:, 1:]
    labels = jax.random.randint(kl, (V,), 0, NUM_CLASSES)                 # data.x[:, 0]
    adj = (jax.random.uniform(ka, (V, V)) < 0.4).astype(F32)
    adj = adj * (1.0 - jnp.eye(V, dtype=F32))                             # adj[s, t] = edge s->t
    batch = jnp.array([0, 0, 0, 0, 1, 1, 1, 1], jnp.int32)
    pool_mat = (batch[None, :] == jnp.arange(B)[:, None]).astype(F32)     # (B, V)

    fwd = jax.jit(gpnn_forward)
    out = jax.block_until_ready(fwd(packed, x_feat, labels, adj, pool_mat))
    assert out.shape == (B, OUT_CHANNELS)

    ref = jax.block_until_ready(reference_forward(params, x_feat, labels, adj, pool_mat))
    rel_err = float(jnp.linalg.norm(out - ref) / (jnp.linalg.norm(ref) + 1e-6))
    assert rel_err < 0.1, f"fused kernel disagrees with reference: rel err {rel_err}"
    print("KERNEL_OK")
</pallas_src>

<mosaic_0001>
module attributes {stable_mosaic.version = 11 : i64} {
  func.func @gpnn_fused_kernel(%arg0: memref<8x8xf32, #tpu.memory_space<vmem>>, %arg1: memref<3x8x8xf32, #tpu.memory_space<vmem>>, %arg2: memref<8x16xf32, #tpu.memory_space<vmem>>, %arg3: memref<8x128xf32, #tpu.memory_space<vmem>>, %arg4: memref<8x16xf32, #tpu.memory_space<vmem>>, %arg5: memref<2x8xf32, #tpu.memory_space<vmem>>, %arg6: memref<8x16xf32, #tpu.memory_space<vmem>>, %arg7: memref<8x128xf32, #tpu.memory_space<vmem>>, %arg8: memref<128x128xf32, #tpu.memory_space<vmem>>, %arg9: memref<2x2x16x16xf32, #tpu.memory_space<vmem>>, %arg10: memref<2x2x1x16xf32, #tpu.memory_space<vmem>>, %arg11: memref<2x2x128x128xf32, #tpu.memory_space<vmem>>, %arg12: memref<2x2x1x128xf32, #tpu.memory_space<vmem>>, %arg13: memref<16x48xf32, #tpu.memory_space<vmem>>, %arg14: memref<3x128x16xf32, #tpu.memory_space<vmem>>, %arg15: memref<2x2x16x16xf32, #tpu.memory_space<vmem>>, %arg16: memref<2x2x1x16xf32, #tpu.memory_space<vmem>>, %arg17: memref<64x32xf32, #tpu.memory_space<vmem>>, %arg18: memref<1x32xf32, #tpu.memory_space<vmem>>, %arg19: memref<32x8xf32, #tpu.memory_space<vmem>>, %arg20: memref<1x8xf32, #tpu.memory_space<vmem>>, %arg21: memref<2x8xf32, #tpu.memory_space<vmem>>) attributes {dimension_semantics = [], scalar_prefetch = 0 : i64, scratch_operands = 0 : i64, tpu.core_type = #tpu.core_type<tc>} {
    %c0 = arith.constant 0 : index
    %c0_0 = arith.constant 0 : index
    %0 = vector.load %arg0[%c0, %c0_0] : memref<8x8xf32, #tpu.memory_space<vmem>>, vector<8x8xf32>
    %c0_1 = arith.constant 0 : index
    %c0_2 = arith.constant 0 : index
    %1 = vector.load %arg5[%c0_1, %c0_2] : memref<2x8xf32, #tpu.memory_space<vmem>>, vector<2x8xf32>
    %c0_3 = arith.constant 0 : index
    %c0_4 = arith.constant 0 : index
    %2 = vector.load %arg7[%c0_3, %c0_4] : memref<8x128xf32, #tpu.memory_space<vmem>>, vector<8x128xf32>
    %c0_5 = arith.constant 0 : index
    %c0_6 = arith.constant 0 : index
    %3 = vector.load %arg8[%c0_5, %c0_6] : memref<128x128xf32, #tpu.memory_space<vmem>>, vector<128x128xf32>
    %c0_7 = arith.constant 0 : index
    %c0_8 = arith.constant 0 : index
    %4 = vector.load %arg6[%c0_7, %c0_8] : memref<8x16xf32, #tpu.memory_space<vmem>>, vector<8x16xf32>
    %c0_9 = arith.constant 0 : index
    %c0_10 = arith.constant 0 : index
    %5 = vector.load %arg13[%c0_9, %c0_10] : memref<16x48xf32, #tpu.memory_space<vmem>>, vector<16x48xf32>
    %c0_11 = arith.constant 0 : index
    %c0_12 = arith.constant 0 : index
    %6 = vector.load %arg2[%c0_11, %c0_12] : memref<8x16xf32, #tpu.memory_space<vmem>>, vector<8x16xf32>
    %c0_13 = arith.constant 0 : index
    %c0_14 = arith.constant 0 : index
    %7 = vector.load %arg3[%c0_13, %c0_14] : memref<8x128xf32, #tpu.memory_space<vmem>>, vector<8x128xf32>
    %cst = arith.constant dense<0.000000e+00> : vector<8x16xf32>
    %8 = tpu.matmul %0, %6, %cst {dimension_numbers = #tpu.dot_dimension_numbers<[1], [0], [0], [1], [0, 0, 1, 1], [], []>} : vector<8x8xf32>, vector<8x16xf32>, vector<8x16xf32> -> vector<8x16xf32>
    %9 = arith.addf %8, %6 : vector<8x16xf32>
    %c0_15 = arith.constant 0 : index
    %c0_16 = arith.constant 0 : index
    %c0_17 = arith.constant 0 : index
    %c0_18 = arith.constant 0 : index
    %10 = vector.load %arg9[%c0_15, %c0_16, %c0_17, %c0_18] : memref<2x2x16x16xf32, #tpu.memory_space<vmem>>, vector<1x1x16x16xf32>
    %11 = vector.shape_cast %10 : vector<1x1x16x16xf32> to vector<16x16xf32>
    %cst_19 = arith.constant dense<0.000000e+00> : vector<8x16xf32>
    %12 = tpu.matmul %9, %11, %cst_19 {dimension_numbers = #tpu.dot_dimension_numbers<[1], [0], [0], [1], [0, 0, 1, 1], [], []>} : vector<8x16xf32>, vector<16x16xf32>, vector<8x16xf32> -> vector<8x16xf32>
    %c0_20 = arith.constant 0 : index
    %c0_21 = arith.constant 0 : index
    %c0_22 = arith.constant 0 : index
    %c0_23 = arith.constant 0 : index
    %13 = vector.load %arg10[%c0_20, %c0_21, %c0_22, %c0_23] : memref<2x2x1x16xf32, #tpu.memory_space<vmem>>, vector<1x1x1x16xf32>
    %14 = vector.shape_cast %13 : vector<1x1x1x16xf32> to vector<1x16xf32>
    %15 = vector.broadcast %14 : vector<1x16xf32> to vector<8x16xf32>
    %16 = arith.addf %12, %15 : vector<8x16xf32>
    %cst_24 = arith.constant 0.000000e+00 : f32
    %17 = vector.broadcast %cst_24 : f32 to vector<8x16xf32>
    %18 = arith.maximumf %16, %17 : vector<8x16xf32>
    %c0_25 = arith.constant 0 : index
    %c1 = arith.constant 1 : index
    %c0_26 = arith.constant 0 : index
    %c0_27 = arith.constant 0 : index
    %19 = vector.load %arg9[%c0_25, %c1, %c0_26, %c0_27] : memref<2x2x16x16xf32, #tpu.memory_space<vmem>>, vector<1x1x16x16xf32>
    %20 = vector.shape_cast %19 : vector<1x1x16x16xf32> to vector<16x16xf32>
    %cst_28 = arith.constant dense<0.000000e+00> : vector<8x16xf32>
    %21 = tpu.matmul %18, %20, %cst_28 {dimension_numbers = #tpu.dot_dimension_numbers<[1], [0], [0], [1], [0, 0, 1, 1], [], []>} : vector<8x16xf32>, vector<16x16xf32>, vector<8x16xf32> -> vector<8x16xf32>
    %c0_29 = arith.constant 0 : index
    %c1_30 = arith.constant 1 : index
    %c0_31 = arith.constant 0 : index
    %c0_32 = arith.constant 0 : index
    %22 = vector.load %arg10[%c0_29, %c1_30, %c0_31, %c0_32] : memref<2x2x1x16xf32, #tpu.memory_space<vmem>>, vector<1x1x1x16xf32>
    %23 = vector.shape_cast %22 : vector<1x1x1x16xf32> to vector<1x16xf32>
    %24 = vector.broadcast %23 : vector<1x16xf32> to vector<8x16xf32>
    %25 = arith.addf %21, %24 : vector<8x16xf32>
    %cst_33 = arith.constant dense<0.000000e+00> : vector<8x128xf32>
    %26 = tpu.matmul %0, %7, %cst_33 {dimension_numbers = #tpu.dot_dimension_numbers<[1], [0], [0], [1], [0, 0, 1, 1], [], []>} : vector<8x8xf32>, vector<8x128xf32>, vector<8x128xf32> -> vector<8x128xf32>
    %27 = arith.mulf %26, %2 : vector<8x128xf32>
    %cst_34 = arith.constant dense<0.000000e+00> : vector<8x128xf32>
    %28 = tpu.matmul %27, %3, %cst_34 {dimension_numbers = #tpu.dot_dimension_numbers<[1], [0], [0], [1], [0, 0, 1, 1], [], []>} : vector<8x128xf32>, vector<128x128xf32>, vector<8x128xf32> -> vector<8x128xf32>
    %29 = arith.addf %26, %28 : vector<8x128xf32>
    %30 = arith.addf %29, %7 : vector<8x128xf32>
    %c0_35 = arith.constant 0 : index
    %c0_36 = arith.constant 0 : index
    %c0_37 = arith.constant 0 : index
    %c0_38 = arith.constant 0 : index
    %31 = vector.load %arg11[%c0_35, %c0_36, %c0_37, %c0_38] : memref<2x2x128x128xf32, #tpu.memory_space<vmem>>, vector<1x1x128x128xf32>
    %32 = vector.shape_cast %31 : vector<1x1x128x128xf32> to vector<128x128xf32>
    %cst_39 = arith.constant dense<0.000000e+00> : vector<8x128xf32>
    %33 = tpu.matmul %30, %32, %cst_39 {dimension_numbers = #tpu.dot_dimension_numbers<[1], [0], [0], [1], [0, 0, 1, 1], [], []>} : vector<8x128xf32>, vector<128x128xf32>, vector<8x128xf32> -> vector<8x128xf32>
    %c0_40 = arith.constant 0 : index
    %c0_41 = arith.constant 0 : index
    %c0_42 = arith.constant 0 : index
    %c0_43 = arith.constant 0 : index
    %34 = vector.load %arg12[%c0_40, %c0_41, %c0_42, %c0_43] : memref<2x2x1x128xf32, #tpu.memory_space<vmem>>, vector<1x1x1x128xf32>
    %35 = vector.shape_cast %34 : vector<1x1x1x128xf32> to vector<1x128xf32>
    %36 = vector.broadcast %35 : vector<1x128xf32> to vector<8x128xf32>
    %37 = arith.addf %33, %36 : vector<8x128xf32>
    %cst_44 = arith.constant 0.000000e+00 : f32
    %38 = vector.broadcast %cst_44 : f32 to vector<8x128xf32>
    %39 = arith.maximumf %37, %38 : vector<8x128xf32>
    %c0_45 = arith.constant 0 : index
    %c1_46 = arith.constant 1 : index
    %c0_47 = arith.constant 0 : index
    %c0_48 = arith.constant 0 : index
    %40 = vector.load %arg11[%c0_45, %c1_46, %c0_47, %c0_48] : memref<2x2x128x128xf32, #tpu.memory_space<vmem>>, vector<1x1x128x128xf32>
    %41 = vector.shape_cast %40 : vector<1x1x128x128xf32> to vector<128x128xf32>
    %cst_49 = arith.constant dense<0.000000e+00> : vector<8x128xf32>
    %42 = tpu.matmul %39, %41, %cst_49 {dimension_numbers = #tpu.dot_dimension_numbers<[1], [0], [0], [1], [0, 0, 1, 1], [], []>} : vector<8x128xf32>, vector<128x128xf32>, vector<8x128xf32> -> vector<8x128xf32>
    %c0_50 = arith.constant 0 : index
    %c1_51 = arith.constant 1 : index
    %c0_52 = arith.constant 0 : index
    %c0_53 = arith.constant 0 : index
    %43 = vector.load %arg12[%c0_50, %c1_51, %c0_52, %c0_53] : memref<2x2x1x128xf32, #tpu.memory_space<vmem>>, vector<1x1x1x128xf32>
    %44 = vector.shape_cast %43 : vector<1x1x1x128xf32> to vector<1x128xf32>
    %45 = vector.broadcast %44 : vector<1x128xf32> to vector<8x128xf32>
    %46 = arith.addf %42, %45 : vector<8x128xf32>
    %cst_54 = arith.constant dense<0.000000e+00> : vector<8x48xf32>
    %47 = tpu.matmul %25, %5, %cst_54 {dimension_numbers = #tpu.dot_dimension_numbers<[1], [0], [0], [1], [0, 0, 1, 1], [], []>} : vector<8x16xf32>, vector<16x48xf32>, vector<8x48xf32> -> vector<8x48xf32>
    %c0_55 = arith.constant 0 : index
    %c0_56 = arith.constant 0 : index
    %c0_57 = arith.constant 0 : index
    %48 = vector.load %arg1[%c0_55, %c0_56, %c0_57] : memref<3x8x8xf32, #tpu.memory_space<vmem>>, vector<1x8x8xf32>
    %49 = vector.shape_cast %48 : vector<1x8x8xf32> to vector<8x8xf32>
    %50 = vector.extract_strided_slice %47 {offsets = [0, 0], sizes = [8, 16], strides = [1, 1]} : vector<8x48xf32> to vector<8x16xf32>
    %cst_58 = arith.constant dense<0.000000e+00> : vector<8x16xf32>
    %51 = tpu.matmul %49, %50, %cst_58 {dimension_numbers = #tpu.dot_dimension_numbers<[1], [0], [0], [1], [0, 0, 1, 1], [], []>} : vector<8x8xf32>, vector<8x16xf32>, vector<8x16xf32> -> vector<8x16xf32>
    %cst_59 = arith.constant dense<0.000000e+00> : vector<8x128xf32>
    %52 = tpu.matmul %49, %46, %cst_59 {dimension_numbers = #tpu.dot_dimension_numbers<[1], [0], [0], [1], [0, 0, 1, 1], [], []>} : vector<8x8xf32>, vector<8x128xf32>, vector<8x128xf32> -> vector<8x128xf32>
    %53 = arith.mulf %52, %2 : vector<8x128xf32>
    %c0_60 = arith.constant 0 : index
    %c0_61 = arith.constant 0 : index
    %c0_62 = arith.constant 0 : index
    %54 = vector.load %arg14[%c0_60, %c0_61, %c0_62] : memref<3x128x16xf32, #tpu.memory_space<vmem>>, vector<1x128x16xf32>
    %55 = vector.shape_cast %54 : vector<1x128x16xf32> to vector<128x16xf32>
    %cst_63 = arith.constant dense<0.000000e+00> : vector<8x16xf32>
    %56 = tpu.matmul %53, %55, %cst_63 {dimension_numbers = #tpu.dot_dimension_numbers<[1], [0], [0], [1], [0, 0, 1, 1], [], []>} : vector<8x128xf32>, vector<128x16xf32>, vector<8x16xf32> -> vector<8x16xf32>
    %57 = arith.addf %4, %51 : vector<8x16xf32>
    %58 = arith.addf %57, %56 : vector<8x16xf32>
    %c1_64 = arith.constant 1 : index
    %c0_65 = arith.constant 0 : index
    %c0_66 = arith.constant 0 : index
    %59 = vector.load %arg1[%c1_64, %c0_65, %c0_66] : memref<3x8x8xf32, #tpu.memory_space<vmem>>, vector<1x8x8xf32>
    %60 = vector.shape_cast %59 : vector<1x8x8xf32> to vector<8x8xf32>
    %61 = vector.extract_strided_slice %47 {offsets = [0, 16], sizes = [8, 16], strides = [1, 1]} : vector<8x48xf32> to vector<8x16xf32>
    %cst_67 = arith.constant dense<0.000000e+00> : vector<8x16xf32>
    %62 = tpu.matmul %60, %61, %cst_67 {dimension_numbers = #tpu.dot_dimension_numbers<[1], [0], [0], [1], [0, 0, 1, 1], [], []>} : vector<8x8xf32>, vector<8x16xf32>, vector<8x16xf32> -> vector<8x16xf32>
    %cst_68 = arith.constant dense<0.000000e+00> : vector<8x128xf32>
    %63 = tpu.matmul %60, %46, %cst_68 {dimension_numbers = #tpu.dot_dimension_numbers<[1], [0], [0], [1], [0, 0, 1, 1], [], []>} : vector<8x8xf32>, vector<8x128xf32>, vector<8x128xf32> -> vector<8x128xf32>
    %64 = arith.mulf %63, %2 : vector<8x128xf32>
    %c1_69 = arith.constant 1 : index
    %c0_70 = arith.constant 0 : index
    %c0_71 = arith.constant 0 : index
    %65 = vector.load %arg14[%c1_69, %c0_70, %c0_71] : memref<3x128x16xf32, #tpu.memory_space<vmem>>, vector<1x128x16xf32>
    %66 = vector.shape_cast %65 : vector<1x128x16xf32> to vector<128x16xf32>
    %cst_72 = arith.constant dense<0.000000e+00> : vector<8x16xf32>
    %67 = tpu.matmul %64, %66, %cst_72 {dimension_numbers = #tpu.dot_dimension_numbers<[1], [0], [0], [1], [0, 0, 1, 1], [], []>} : vector<8x128xf32>, vector<128x16xf32>, vector<8x16xf32> -> vector<8x16xf32>
    %68 = arith.addf %58, %62 : vector<8x16xf32>
    %69 = arith.addf %68, %67 : vector<8x16xf32>
    %c2 = arith.constant 2 : index
    %c0_73 = arith.constant 0 : index
    %c0_74 = arith.constant 0 : index
    %70 = vector.load %arg1[%c2, %c0_73, %c0_74] : memref<3x8x8xf32, #tpu.memory_space<vmem>>, vector<1x8x8xf32>
    %71 = vector.shape_cast %70 : vector<1x8x8xf32> to vector<8x8xf32>
    %72 = vector.extract_strided_slice %47 {offsets = [0, 32], sizes = [8, 16], strides = [1, 1]} : vector<8x48xf32> to vector<8x16xf32>
    %cst_75 = arith.constant dense<0.000000e+00> : vector<8x16xf32>
    %73 = tpu.matmul %71, %72, %cst_75 {dimension_numbers = #tpu.dot_dimension_numbers<[1], [0], [0], [1], [0, 0, 1, 1], [], []>} : vector<8x8xf32>, vector<8x16xf32>, vector<8x16xf32> -> vector<8x16xf32>
    %cst_76 = arith.constant dense<0.000000e+00> : vector<8x128xf32>
    %74 = tpu.matmul %71, %46, %cst_76 {dimension_numbers = #tpu.dot_dimension_numbers<[1], [0], [0], [1], [0, 0, 1, 1], [], []>} : vector<8x8xf32>, vector<8x128xf32>, vector<8x128xf32> -> vector<8x128xf32>
    %75 = arith.mulf %74, %2 : vector<8x128xf32>
    %c2_77 = arith.constant 2 : index
    %c0_78 = arith.constant 0 : index
    %c0_79 = arith.constant 0 : index
    %76 = vector.load %arg14[%c2_77, %c0_78, %c0_79] : memref<3x128x16xf32, #tpu.memory_space<vmem>>, vector<1x128x16xf32>
    %77 = vector.shape_cast %76 : vector<1x128x16xf32> to vector<128x16xf32>
    %cst_80 = arith.constant dense<0.000000e+00> : vector<8x16xf32>
    %78 = tpu.matmul %75, %77, %cst_80 {dimension_numbers = #tpu.dot_dimension_numbers<[1], [0], [0], [1], [0, 0, 1, 1], [], []>} : vector<8x128xf32>, vector<128x16xf32>, vector<8x16xf32> -> vector<8x16xf32>
    %79 = arith.addf %69, %73 : vector<8x16xf32>
    %80 = arith.addf %79, %78 : vector<8x16xf32>
    %cst_81 = arith.constant dense<0.000000e+00> : vector<2x16xf32>
    %81 = tpu.matmul %1, %80, %cst_81 {dimension_numbers = #tpu.dot_dimension_numbers<[1], [0], [0], [1], [0, 0, 1, 1], [], []>} : vector<2x8xf32>, vector<8x16xf32>, vector<2x16xf32> -> vector<2x16xf32>
    %cst_82 = arith.constant dense<0.000000e+00> : vector<8x16xf32>
    %82 = tpu.matmul %0, %80, %cst_82 {dimension_numbers = #tpu.dot_dimension_numbers<[1], [0], [0], [1], [0, 0, 1, 1], [], []>} : vector<8x8xf32>, vector<8x16xf32>, vector<8x16xf32> -> vector<8x16xf32>
    %83 = arith.addf %82, %80 : vector<8x16xf32>
    %c1_83 = arith.constant 1 : index
    %c0_84 = arith.constant 0 : index
    %c0_85 = arith.constant 0 : index
    %c0_86 = arith.constant 0 : index
    %84 = vector.load %arg9[%c1_83, %c0_84, %c0_85, %c0_86] : memref<2x2x16x16xf32, #tpu.memory_space<vmem>>, vector<1x1x16x16xf32>
    %85 = vector.shape_cast %84 : vector<1x1x16x16xf32> to vector<16x16xf32>
    %cst_87 = arith.constant dense<0.000000e+00> : vector<8x16xf32>
    %86 = tpu.matmul %83, %85, %cst_87 {dimension_numbers = #tpu.dot_dimension_numbers<[1], [0], [0], [1], [0, 0, 1, 1], [], []>} : vector<8x16xf32>, vector<16x16xf32>, vector<8x16xf32> -> vector<8x16xf32>
    %c1_88 = arith.constant 1 : index
    %c0_89 = arith.constant 0 : index
    %c0_90 = arith.constant 0 : index
    %c0_91 = arith.constant 0 : index
    %87 = vector.load %arg10[%c1_88, %c0_89, %c0_90, %c0_91] : memref<2x2x1x16xf32, #tpu.memory_space<vmem>>, vector<1x1x1x16xf32>
    %88 = vector.shape_cast %87 : vector<1x1x1x16xf32> to vector<1x16xf32>
    %89 = vector.broadcast %88 : vector<1x16xf32> to vector<8x16xf32>
    %90 = arith.addf %86, %89 : vector<8x16xf32>
    %cst_92 = arith.constant 0.000000e+00 : f32
    %91 = vector.broadcast %cst_92 : f32 to vector<8x16xf32>
    %92 = arith.maximumf %90, %91 : vector<8x16xf32>
    %c1_93 = arith.constant 1 : index
    %c1_94 = arith.constant 1 : index
    %c0_95 = arith.constant 0 : index
    %c0_96 = arith.constant 0 : index
    %93 = vector.load %arg9[%c1_93, %c1_94, %c0_95, %c0_96] : memref<2x2x16x16xf32, #tpu.memory_space<vmem>>, vector<1x1x16x16xf32>
    %94 = vector.shape_cast %93 : vector<1x1x16x16xf32> to vector<16x16xf32>
    %cst_97 = arith.constant dense<0.000000e+00> : vector<8x16xf32>
    %95 = tpu.matmul %92, %94, %cst_97 {dimension_numbers = #tpu.dot_dimension_numbers<[1], [0], [0], [1], [0, 0, 1, 1], [], []>} : vector<8x16xf32>, vector<16x16xf32>, vector<8x16xf32> -> vector<8x16xf32>
    %c1_98 = arith.constant 1 : index
    %c1_99 = arith.constant 1 : index
    %c0_100 = arith.constant 0 : index
    %c0_101 = arith.constant 0 : index
    %96 = vector.load %arg10[%c1_98, %c1_99, %c0_100, %c0_101] : memref<2x2x1x16xf32, #tpu.memory_space<vmem>>, vector<1x1x1x16xf32>
    %97 = vector.shape_cast %96 : vector<1x1x1x16xf32> to vector<1x16xf32>
    %98 = vector.broadcast %97 : vector<1x16xf32> to vector<8x16xf32>
    %99 = arith.addf %95, %98 : vector<8x16xf32>
    %cst_102 = arith.constant dense<0.000000e+00> : vector<8x128xf32>
    %100 = tpu.matmul %0, %46, %cst_102 {dimension_numbers = #tpu.dot_dimension_numbers<[1], [0], [0], [1], [0, 0, 1, 1], [], []>} : vector<8x8xf32>, vector<8x128xf32>, vector<8x128xf32> -> vector<8x128xf32>
    %101 = arith.mulf %100, %2 : vector<8x128xf32>
    %cst_103 = arith.constant dense<0.000000e+00> : vector<8x128xf32>
    %102 = tpu.matmul %101, %3, %cst_103 {dimension_numbers = #tpu.dot_dimension_numbers<[1], [0], [0], [1], [0, 0, 1, 1], [], []>} : vector<8x128xf32>, vector<128x128xf32>, vector<8x128xf32> -> vector<8x128xf32>
    %103 = arith.addf %100, %102 : vector<8x128xf32>
    %104 = arith.addf %103, %46 : vector<8x128xf32>
    %c1_104 = arith.constant 1 : index
    %c0_105 = arith.constant 0 : index
    %c0_106 = arith.constant 0 : index
    %c0_107 = arith.constant 0 : index
    %105 = vector.load %arg11[%c1_104, %c0_105, %c0_106, %c0_107] : memref<2x2x128x128xf32, #tpu.memory_space<vmem>>, vector<1x1x128x128xf32>
    %106 = vector.shape_cast %105 : vector<1x1x128x128xf32> to vector<128x128xf32>
    %cst_108 = arith.constant dense<0.000000e+00> : vector<8x128xf32>
    %107 = tpu.matmul %104, %106, %cst_108 {dimension_numbers = #tpu.dot_dimension_numbers<[1], [0], [0], [1], [0, 0, 1, 1], [], []>} : vector<8x128xf32>, vector<128x128xf32>, vector<8x128xf32> -> vector<8x128xf32>
    %c1_109 = arith.constant 1 : index
    %c0_110 = arith.constant 0 : index
    %c0_111 = arith.constant 0 : index
    %c0_112 = arith.constant 0 : index
    %108 = vector.load %arg12[%c1_109, %c0_110, %c0_111, %c0_112] : memref<2x2x1x128xf32, #tpu.memory_space<vmem>>, vector<1x1x1x128xf32>
    %109 = vector.shape_cast %108 : vector<1x1x1x128xf32> to vector<1x128xf32>
    %110 = vector.broadcast %109 : vector<1x128xf32> to vector<8x128xf32>
    %111 = arith.addf %107, %110 : vector<8x128xf32>
    %cst_113 = arith.constant 0.000000e+00 : f32
    %112 = vector.broadcast %cst_113 : f32 to vector<8x128xf32>
    %113 = arith.maximumf %111, %112 : vector<8x128xf32>
    %c1_114 = arith.constant 1 : index
    %c1_115 = arith.constant 1 : index
    %c0_116 = arith.constant 0 : index
    %c0_117 = arith.constant 0 : index
    %114 = vector.load %arg11[%c1_114, %c1_115, %c0_116, %c0_117] : memref<2x2x128x128xf32, #tpu.memory_space<vmem>>, vector<1x1x128x128xf32>
    %115 = vector.shape_cast %114 : vector<1x1x128x128xf32> to vector<128x128xf32>
    %cst_118 = arith.constant dense<0.000000e+00> : vector<8x128xf32>
    %116 = tpu.matmul %113, %115, %cst_118 {dimension_numbers = #tpu.dot_dimension_numbers<[1], [0], [0], [1], [0, 0, 1, 1], [], []>} : vector<8x128xf32>, vector<128x128xf32>, vector<8x128xf32> -> vector<8x128xf32>
    %c1_119 = arith.constant 1 : index
    %c1_120 = arith.constant 1 : index
    %c0_121 = arith.constant 0 : index
    %c0_122 = arith.constant 0 : index
    %117 = vector.load %arg12[%c1_119, %c1_120, %c0_121, %c0_122] : memref<2x2x1x128xf32, #tpu.memory_space<vmem>>, vector<1x1x1x128xf32>
    %118 = vector.shape_cast %117 : vector<1x1x1x128xf32> to vector<1x128xf32>
    %119 = vector.broadcast %118 : vector<1x128xf32> to vector<8x128xf32>
    %120 = arith.addf %116, %119 : vector<8x128xf32>
    %cst_123 = arith.constant dense<0.000000e+00> : vector<8x48xf32>
    %121 = tpu.matmul %99, %5, %cst_123 {dimension_numbers = #tpu.dot_dimension_numbers<[1], [0], [0], [1], [0, 0, 1, 1], [], []>} : vector<8x16xf32>, vector<16x48xf32>, vector<8x48xf32> -> vector<8x48xf32>
    %c0_124 = arith.constant 0 : index
    %c0_125 = arith.constant 0 : index
    %c0_126 = arith.constant 0 : index
    %122 = vector.load %arg1[%c0_124, %c0_125, %c0_126] : memref<3x8x8xf32, #tpu.memory_space<vmem>>, vector<1x8x8xf32>
    %123 = vector.shape_cast %122 : vector<1x8x8xf32> to vector<8x8xf32>
    %124 = vector.extract_strided_slice %121 {offsets = [0, 0], sizes = [8, 16], strides = [1, 1]} : vector<8x48xf32> to vector<8x16xf32>
    %cst_127 = arith.constant dense<0.000000e+00> : vector<8x16xf32>
    %125 = tpu.matmul %123, %124, %cst_127 {dimension_numbers = #tpu.dot_dimension_numbers<[1], [0], [0], [1], [0, 0, 1, 1], [], []>} : vector<8x8xf32>, vector<8x16xf32>, vector<8x16xf32> -> vector<8x16xf32>
    %cst_128 = arith.constant dense<0.000000e+00> : vector<8x128xf32>
    %126 = tpu.matmul %123, %120, %cst_128 {dimension_numbers = #tpu.dot_dimension_numbers<[1], [0], [0], [1], [0, 0, 1, 1], [], []>} : vector<8x8xf32>, vector<8x128xf32>, vector<8x128xf32> -> vector<8x128xf32>
    %127 = arith.mulf %126, %2 : vector<8x128xf32>
    %c0_129 = arith.constant 0 : index
    %c0_130 = arith.constant 0 : index
    %c0_131 = arith.constant 0 : index
    %128 = vector.load %arg14[%c0_129, %c0_130, %c0_131] : memref<3x128x16xf32, #tpu.memory_space<vmem>>, vector<1x128x16xf32>
    %129 = vector.shape_cast %128 : vector<1x128x16xf32> to vector<128x16xf32>
    %cst_132 = arith.constant dense<0.000000e+00> : vector<8x16xf32>
    %130 = tpu.matmul %127, %129, %cst_132 {dimension_numbers = #tpu.dot_dimension_numbers<[1], [0], [0], [1], [0, 0, 1, 1], [], []>} : vector<8x128xf32>, vector<128x16xf32>, vector<8x16xf32> -> vector<8x16xf32>
    %131 = arith.addf %4, %125 : vector<8x16xf32>
    %132 = arith.addf %131, %130 : vector<8x16xf32>
    %c1_133 = arith.constant 1 : index
    %c0_134 = arith.constant 0 : index
    %c0_135 = arith.constant 0 : index
    %133 = vector.load %arg1[%c1_133, %c0_134, %c0_135] : memref<3x8x8xf32, #tpu.memory_space<vmem>>, vector<1x8x8xf32>
    %134 = vector.shape_cast %133 : vector<1x8x8xf32> to vector<8x8xf32>
    %135 = vector.extract_strided_slice %121 {offsets = [0, 16], sizes = [8, 16], strides = [1, 1]} : vector<8x48xf32> to vector<8x16xf32>
    %cst_136 = arith.constant dense<0.000000e+00> : vector<8x16xf32>
    %136 = tpu.matmul %134, %135, %cst_136 {dimension_numbers = #tpu.dot_dimension_numbers<[1], [0], [0], [1], [0, 0, 1, 1], [], []>} : vector<8x8xf32>, vector<8x16xf32>, vector<8x16xf32> -> vector<8x16xf32>
    %cst_137 = arith.constant dense<0.000000e+00> : vector<8x128xf32>
    %137 = tpu.matmul %134, %120, %cst_137 {dimension_numbers = #tpu.dot_dimension_numbers<[1], [0], [0], [1], [0, 0, 1, 1], [], []>} : vector<8x8xf32>, vector<8x128xf32>, vector<8x128xf32> -> vector<8x128xf32>
    %138 = arith.mulf %137, %2 : vector<8x128xf32>
    %c1_138 = arith.constant 1 : index
    %c0_139 = arith.constant 0 : index
    %c0_140 = arith.constant 0 : index
    %139 = vector.load %arg14[%c1_138, %c0_139, %c0_140] : memref<3x128x16xf32, #tpu.memory_space<vmem>>, vector<1x128x16xf32>
    %140 = vector.shape_cast %139 : vector<1x128x16xf32> to vector<128x16xf32>
    %cst_141 = arith.constant dense<0.000000e+00> : vector<8x16xf32>
    %141 = tpu.matmul %138, %140, %cst_141 {dimension_numbers = #tpu.dot_dimension_numbers<[1], [0], [0], [1], [0, 0, 1, 1], [], []>} : vector<8x128xf32>, vector<128x16xf32>, vector<8x16xf32> -> vector<8x16xf32>
    %142 = arith.addf %132, %136 : vector<8x16xf32>
    %143 = arith.addf %142, %141 : vector<8x16xf32>
    %c2_142 = arith.constant 2 : index
    %c0_143 = arith.constant 0 : index
    %c0_144 = arith.constant 0 : index
    %144 = vector.load %arg1[%c2_142, %c0_143, %c0_144] : memref<3x8x8xf32, #tpu.memory_space<vmem>>, vector<1x8x8xf32>
    %145 = vector.shape_cast %144 : vector<1x8x8xf32> to vector<8x8xf32>
    %146 = vector.extract_strided_slice %121 {offsets = [0, 32], sizes = [8, 16], strides = [1, 1]} : vector<8x48xf32> to vector<8x16xf32>
    %cst_145 = arith.constant dense<0.000000e+00> : vector<8x16xf32>
    %147 = tpu.matmul %145, %146, %cst_145 {dimension_numbers = #tpu.dot_dimension_numbers<[1], [0], [0], [1], [0, 0, 1, 1], [], []>} : vector<8x8xf32>, vector<8x16xf32>, vector<8x16xf32> -> vector<8x16xf32>
    %cst_146 = arith.constant dense<0.000000e+00> : vector<8x128xf32>
    %148 = tpu.matmul %145, %120, %cst_146 {dimension_numbers = #tpu.dot_dimension_numbers<[1], [0], [0], [1], [0, 0, 1, 1], [], []>} : vector<8x8xf32>, vector<8x128xf32>, vector<8x128xf32> -> vector<8x128xf32>
    %149 = arith.mulf %148, %2 : vector<8x128xf32>
    %c2_147 = arith.constant 2 : index
    %c0_148 = arith.constant 0 : index
    %c0_149 = arith.constant 0 : index
    %150 = vector.load %arg14[%c2_147, %c0_148, %c0_149] : memref<3x128x16xf32, #tpu.memory_space<vmem>>, vector<1x128x16xf32>
    %151 = vector.shape_cast %150 : vector<1x128x16xf32> to vector<128x16xf32>
    %cst_150 = arith.constant dense<0.000000e+00> : vector<8x16xf32>
    %152 = tpu.matmul %149, %151, %cst_150 {dimension_numbers = #tpu.dot_dimension_numbers<[1], [0], [0], [1], [0, 0, 1, 1], [], []>} : vector<8x128xf32>, vector<128x16xf32>, vector<8x16xf32> -> vector<8x16xf32>
    %153 = arith.addf %143, %147 : vector<8x16xf32>
    %154 = arith.addf %153, %152 : vector<8x16xf32>
    %cst_151 = arith.constant dense<0.000000e+00> : vector<2x16xf32>
    %155 = tpu.matmul %1, %154, %cst_151 {dimension_numbers = #tpu.dot_dimension_numbers<[1], [0], [0], [1], [0, 0, 1, 1], [], []>} : vector<2x8xf32>, vector<8x16xf32>, vector<2x16xf32> -> vector<2x16xf32>
    %c0_152 = arith.constant 0 : index
    %c0_153 = arith.constant 0 : index
    %156 = vector.load %arg4[%c0_152, %c0_153] : memref<8x16xf32, #tpu.memory_space<vmem>>, vector<8x16xf32>
    %cst_154 = arith.constant dense<0.000000e+00> : vector<8x16xf32>
    %157 = tpu.matmul %0, %156, %cst_154 {dimension_numbers = #tpu.dot_dimension_numbers<[1], [0], [0], [1], [0, 0, 1, 1], [], []>} : vector<8x8xf32>, vector<8x16xf32>, vector<8x16xf32> -> vector<8x16xf32>
    %158 = arith.addf %157, %156 : vector<8x16xf32>
    %c0_155 = arith.constant 0 : index
    %c0_156 = arith.constant 0 : index
    %c0_157 = arith.constant 0 : index
    %c0_158 = arith.constant 0 : index
    %159 = vector.load %arg15[%c0_155, %c0_156, %c0_157, %c0_158] : memref<2x2x16x16xf32, #tpu.memory_space<vmem>>, vector<1x1x16x16xf32>
    %160 = vector.shape_cast %159 : vector<1x1x16x16xf32> to vector<16x16xf32>
    %cst_159 = arith.constant dense<0.000000e+00> : vector<8x16xf32>
    %161 = tpu.matmul %158, %160, %cst_159 {dimension_numbers = #tpu.dot_dimension_numbers<[1], [0], [0], [1], [0, 0, 1, 1], [], []>} : vector<8x16xf32>, vector<16x16xf32>, vector<8x16xf32> -> vector<8x16xf32>
    %c0_160 = arith.constant 0 : index
    %c0_161 = arith.constant 0 : index
    %c0_162 = arith.constant 0 : index
    %c0_163 = arith.constant 0 : index
    %162 = vector.load %arg16[%c0_160, %c0_161, %c0_162, %c0_163] : memref<2x2x1x16xf32, #tpu.memory_space<vmem>>, vector<1x1x1x16xf32>
    %163 = vector.shape_cast %162 : vector<1x1x1x16xf32> to vector<1x16xf32>
    %164 = vector.broadcast %163 : vector<1x16xf32> to vector<8x16xf32>
    %165 = arith.addf %161, %164 : vector<8x16xf32>
    %cst_164 = arith.constant 0.000000e+00 : f32
    %166 = vector.broadcast %cst_164 : f32 to vector<8x16xf32>
    %167 = arith.maximumf %165, %166 : vector<8x16xf32>
    %c0_165 = arith.constant 0 : index
    %c1_166 = arith.constant 1 : index
    %c0_167 = arith.constant 0 : index
    %c0_168 = arith.constant 0 : index
    %168 = vector.load %arg15[%c0_165, %c1_166, %c0_167, %c0_168] : memref<2x2x16x16xf32, #tpu.memory_space<vmem>>, vector<1x1x16x16xf32>
    %169 = vector.shape_cast %168 : vector<1x1x16x16xf32> to vector<16x16xf32>
    %cst_169 = arith.constant dense<0.000000e+00> : vector<8x16xf32>
    %170 = tpu.matmul %167, %169, %cst_169 {dimension_numbers = #tpu.dot_dimension_numbers<[1], [0], [0], [1], [0, 0, 1, 1], [], []>} : vector<8x16xf32>, vector<16x16xf32>, vector<8x16xf32> -> vector<8x16xf32>
    %c0_170 = arith.constant 0 : index
    %c1_171 = arith.constant 1 : index
    %c0_172 = arith.constant 0 : index
    %c0_173 = arith.constant 0 : index
    %171 = vector.load %arg16[%c0_170, %c1_171, %c0_172, %c0_173] : memref<2x2x1x16xf32, #tpu.memory_space<vmem>>, vector<1x1x1x16xf32>
    %172 = vector.shape_cast %171 : vector<1x1x1x16xf32> to vector<1x16xf32>
    %173 = vector.broadcast %172 : vector<1x16xf32> to vector<8x16xf32>
    %174 = arith.addf %170, %173 : vector<8x16xf32>
    %cst_174 = arith.constant dense<0.000000e+00> : vector<2x16xf32>
    %175 = tpu.matmul %1, %174, %cst_174 {dimension_numbers = #tpu.dot_dimension_numbers<[1], [0], [0], [1], [0, 0, 1, 1], [], []>} : vector<2x8xf32>, vector<8x16xf32>, vector<2x16xf32> -> vector<2x16xf32>
    %cst_175 = arith.constant dense<0.000000e+00> : vector<8x16xf32>
    %176 = tpu.matmul %0, %174, %cst_175 {dimension_numbers = #tpu.dot_dimension_numbers<[1], [0], [0], [1], [0, 0, 1, 1], [], []>} : vector<8x8xf32>, vector<8x16xf32>, vector<8x16xf32> -> vector<8x16xf32>
    %177 = arith.addf %176, %174 : vector<8x16xf32>
    %c1_176 = arith.constant 1 : index
    %c0_177 = arith.constant 0 : index
    %c0_178 = arith.constant 0 : index
    %c0_179 = arith.constant 0 : index
    %178 = vector.load %arg15[%c1_176, %c0_177, %c0_178, %c0_179] : memref<2x2x16x16xf32, #tpu.memory_space<vmem>>, vector<1x1x16x16xf32>
    %179 = vector.shape_cast %178 : vector<1x1x16x16xf32> to vector<16x16xf32>
    %cst_180 = arith.constant dense<0.000000e+00> : vector<8x16xf32>
    %180 = tpu.matmul %177, %179, %cst_180 {dimension_numbers = #tpu.dot_dimension_numbers<[1], [0], [0], [1], [0, 0, 1, 1], [], []>} : vector<8x16xf32>, vector<16x16xf32>, vector<8x16xf32> -> vector<8x16xf32>
    %c1_181 = arith.constant 1 : index
    %c0_182 = arith.constant 0 : index
    %c0_183 = arith.constant 0 : index
    %c0_184 = arith.constant 0 : index
    %181 = vector.load %arg16[%c1_181, %c0_182, %c0_183, %c0_184] : memref<2x2x1x16xf32, #tpu.memory_space<vmem>>, vector<1x1x1x16xf32>
    %182 = vector.shape_cast %181 : vector<1x1x1x16xf32> to vector<1x16xf32>
    %183 = vector.broadcast %182 : vector<1x16xf32> to vector<8x16xf32>
    %184 = arith.addf %180, %183 : vector<8x16xf32>
    %cst_185 = arith.constant 0.000000e+00 : f32
    %185 = vector.broadcast %cst_185 : f32 to vector<8x16xf32>
    %186 = arith.maximumf %184, %185 : vector<8x16xf32>
    %c1_186 = arith.constant 1 : index
    %c1_187 = arith.constant 1 : index
    %c0_188 = arith.constant 0 : index
    %c0_189 = arith.constant 0 : index
    %187 = vector.load %arg15[%c1_186, %c1_187, %c0_188, %c0_189] : memref<2x2x16x16xf32, #tpu.memory_space<vmem>>, vector<1x1x16x16xf32>
    %188 = vector.shape_cast %187 : vector<1x1x16x16xf32> to vector<16x16xf32>
    %cst_190 = arith.constant dense<0.000000e+00> : vector<8x16xf32>
    %189 = tpu.matmul %186, %188, %cst_190 {dimension_numbers = #tpu.dot_dimension_numbers<[1], [0], [0], [1], [0, 0, 1, 1], [], []>} : vector<8x16xf32>, vector<16x16xf32>, vector<8x16xf32> -> vector<8x16xf32>
    %c1_191 = arith.constant 1 : index
    %c1_192 = arith.constant 1 : index
    %c0_193 = arith.constant 0 : index
    %c0_194 = arith.constant 0 : index
    %190 = vector.load %arg16[%c1_191, %c1_192, %c0_193, %c0_194] : memref<2x2x1x16xf32, #tpu.memory_space<vmem>>, vector<1x1x1x16xf32>
    %191 = vector.shape_cast %190 : vector<1x1x1x16xf32> to vector<1x16xf32>
    %192 = vector.broadcast %191 : vector<1x16xf32> to vector<8x16xf32>
    %193 = arith.addf %189, %192 : vector<8x16xf32>
    %cst_195 = arith.constant dense<0.000000e+00> : vector<2x16xf32>
    %194 = tpu.matmul %1, %193, %cst_195 {dimension_numbers = #tpu.dot_dimension_numbers<[1], [0], [0], [1], [0, 0, 1, 1], [], []>} : vector<2x8xf32>, vector<8x16xf32>, vector<2x16xf32> -> vector<2x16xf32>
    %c0_196 = arith.constant 0 : index
    %c0_197 = arith.constant 0 : index
    %195 = vector.load %arg17[%c0_196, %c0_197] : memref<64x32xf32, #tpu.memory_space<vmem>>, vector<64x32xf32>
    %c0_198 = arith.constant 0 : index
    %c0_199 = arith.constant 0 : index
    %196 = vector.load %arg18[%c0_198, %c0_199] : memref<1x32xf32, #tpu.memory_space<vmem>>, vector<1x32xf32>
    %197 = vector.extract_strided_slice %195 {offsets = [0, 0], sizes = [16, 32], strides = [1, 1]} : vector<64x32xf32> to vector<16x32xf32>
    %cst_200 = arith.constant dense<0.000000e+00> : vector<2x32xf32>
    %198 = tpu.matmul %175, %197, %cst_200 {dimension_numbers = #tpu.dot_dimension_numbers<[1], [0], [0], [1], [0, 0, 1, 1], [], []>} : vector<2x16xf32>, vector<16x32xf32>, vector<2x32xf32> -> vector<2x32xf32>
    %199 = vector.broadcast %196 : vector<1x32xf32> to vector<2x32xf32>
    %200 = arith.addf %199, %198 : vector<2x32xf32>
    %201 = vector.extract_strided_slice %195 {offsets = [16, 0], sizes = [16, 32], strides = [1, 1]} : vector<64x32xf32> to vector<16x32xf32>
    %cst_201 = arith.constant dense<0.000000e+00> : vector<2x32xf32>
    %202 = tpu.matmul %194, %201, %cst_201 {dimension_numbers = #tpu.dot_dimension_numbers<[1], [0], [0], [1], [0, 0, 1, 1], [], []>} : vector<2x16xf32>, vector<16x32xf32>, vector<2x32xf32> -> vector<2x32xf32>
    %203 = arith.addf %200, %202 : vector<2x32xf32>
    %204 = vector.extract_strided_slice %195 {offsets = [32, 0], sizes = [16, 32], strides = [1, 1]} : vector<64x32xf32> to vector<16x32xf32>
    %cst_202 = arith.constant dense<0.000000e+00> : vector<2x32xf32>
    %205 = tpu.matmul %81, %204, %cst_202 {dimension_numbers = #tpu.dot_dimension_numbers<[1], [0], [0], [1], [0, 0, 1, 1], [], []>} : vector<2x16xf32>, vector<16x32xf32>, vector<2x32xf32> -> vector<2x32xf32>
    %206 = arith.addf %203, %205 : vector<2x32xf32>
    %207 = vector.extract_strided_slice %195 {offsets = [48, 0], sizes = [16, 32], strides = [1, 1]} : vector<64x32xf32> to vector<16x32xf32>
    %cst_203 = arith.constant dense<0.000000e+00> : vector<2x32xf32>
    %208 = tpu.matmul %155, %207, %cst_203 {dimension_numbers = #tpu.dot_dimension_numbers<[1], [0], [0], [1], [0, 0, 1, 1], [], []>} : vector<2x16xf32>, vector<16x32xf32>, vector<2x32xf32> -> vector<2x32xf32>
    %209 = arith.addf %206, %208 : vector<2x32xf32>
    %cst_204 = arith.constant 0.000000e+00 : f32
    %210 = vector.broadcast %cst_204 : f32 to vector<2x32xf32>
    %211 = arith.maximumf %209, %210 : vector<2x32xf32>
    %c0_205 = arith.constant 0 : index
    %c0_206 = arith.constant 0 : index
    %212 = vector.load %arg19[%c0_205, %c0_206] : memref<32x8xf32, #tpu.memory_space<vmem>>, vector<32x8xf32>
    %cst_207 = arith.constant dense<0.000000e+00> : vector<2x8xf32>
    %213 = tpu.matmul %211, %212, %cst_207 {dimension_numbers = #tpu.dot_dimension_numbers<[1], [0], [0], [1], [0, 0, 1, 1], [], []>} : vector<2x32xf32>, vector<32x8xf32>, vector<2x8xf32> -> vector<2x8xf32>
    %c0_208 = arith.constant 0 : index
    %c0_209 = arith.constant 0 : index
    %214 = vector.load %arg20[%c0_208, %c0_209] : memref<1x8xf32, #tpu.memory_space<vmem>>, vector<1x8xf32>
    %215 = vector.broadcast %214 : vector<1x8xf32> to vector<2x8xf32>
    %216 = arith.addf %213, %215 : vector<2x8xf32>
    %c0_210 = arith.constant 0 : index
    %c0_211 = arith.constant 0 : index
    %217 = vector.load %arg21[%c0_210, %c0_211] : memref<2x8xf32, #tpu.memory_space<vmem>>, vector<2x8xf32>
    tpu.vector_store %arg21[%c0_210, %c0_211], %216 {strides = array<i32>} : memref<2x8xf32, #tpu.memory_space<vmem>>, vector<2x8xf32>,
    return
  }
}

</mosaic_0001>

<bundles_post_ra>
// kernel: gpnn_forward.1
= control target key start
LH: loop header
LB: loop body
LE: loop exit
PB: predicated region body
PF: predicated region fallthrough
CT: control target
= control target key end

     0   :  { %s6548_s0 = inlined_call_operand.vmem [shape: f32[8,8], index: 0, kind: input, shape index: {}]   ;;  %s6549_s1 = inlined_call_operand.vmem [shape: f32[3,8,8], index: 1, kind: input, shape index: {}]   ;;  %s6550_s2 = inlined_call_operand.vmem [shape: f32[8,16], index: 2, kind: input, shape index: {}]   ;;  %s6551_s3 = inlined_call_operand.vmem [shape: f32[8,128], index: 3, kind: input, shape index: {}]   ;;  %s6552_s4 = inlined_call_operand.vmem [shape: f32[8,16], index: 4, kind: input, shape index: {}]   ;;  %s6553_s5 = inlined_call_operand.vmem [shape: f32[2,8], index: 5, kind: input, shape index: {}]   ;;  %s6554_s6 = inlined_call_operand.vmem [shape: f32[8,16], index: 6, kind: input, shape index: {}]   ;;  %s6555_s7 = inlined_call_operand.vmem [shape: f32[8,128], index: 7, kind: input, shape index: {}]   ;;  %s6556_s8 = inlined_call_operand.vmem [shape: f32[128,128], index: 8, kind: input, shape index: {}]   ;;  %s6557_s9 = inlined_call_operand.vmem [shape: f32[2,2,16,16], index: 9, kind: input, shape index: {}]   ;;  %s6558_s10 = inlined_call_operand.vmem [shape: f32[2,2,1,16], index: 10, kind: input, shape index: {}]   ;;  %s6559_s11 = inlined_call_operand.vmem [shape: f32[2,2,128,128], index: 11, kind: input, shape index: {}]   ;;  %s6560_s12 = inlined_call_operand.vmem [shape: f32[2,2,1,128], index: 12, kind: input, shape index: {}]   ;;  %s6561_s13 = inlined_call_operand.vmem [shape: f32[16,48], index: 13, kind: input, shape index: {}]   ;;  %s6562_s14 = inlined_call_operand.vmem [shape: f32[3,128,16], index: 14, kind: input, shape index: {}]   ;;  %s6563_s15 = inlined_call_operand.vmem [shape: f32[2,2,16,16], index: 15, kind: input, shape index: {}]   ;;  %s6564_s16 = inlined_call_operand.vmem [shape: f32[2,2,1,16], index: 16, kind: input, shape index: {}]   ;;  %s6565_s17 = inlined_call_operand.vmem [shape: f32[64,32], index: 17, kind: input, shape index: {}]   ;;  %s6566_s18 = inlined_call_operand.vmem [shape: f32[1,32], index: 18, kind: input, shape index: {}]   ;;  %s6567_s19 = inlined_call_operand.vmem [shape: f32[32,8], index: 19, kind: input, shape index: {}]   ;;  %s6568_s20 = inlined_call_operand.vmem [shape: f32[1,8], index: 20, kind: input, shape index: {}]   ;;  %s6569_s21 = inlined_call_operand.hbm [shape: f32[2,8], index: 21, kind: output, shape index: {}]  }
   0x1   :  { %6573 = sst [smem:[#allocation5_spill]] %s6548_s0 }
   0x2   :  { %6574 = sst [smem:[#allocation6_spill]] %s6549_s1 }
   0x3   :  { %6575 = sst [smem:[#allocation7_spill]] %s6550_s2 }
   0x4   :  { %6576 = sst [smem:[#allocation8_spill]] %s6551_s3 }
   0x5   :  { %6577 = sst [smem:[#allocation9_spill]] %s6552_s4 }
   0x6   :  { %6578 = sst [smem:[#allocation10_spill]] %s6553_s5 }
   0x7   :  { %6579 = sst [smem:[#allocation11_spill]] %s6564_s16 }
   0x8   :  { %s6580_s26 = sld [smem:[#allocation7_spill]]  ;;  %s6581_s16 = sld [smem:[#allocation5_spill]]  ;;  %vm93_vm0 = vcmask 64512   ;;  %v5399_v2 = vmov 0.0   ;;  %vm5400_vm1 = vmmov 0  }
   0x9   :  { %4364 = vmatprep.subr.mxu1 %v5399_v2  ;;  %4366 = vmatprep.mubr.msk.f32.mxu1 %vm5400_vm1, %v5399_v2 }
   0xe   :  { %v91_v0 = vld [vmem:[%s6580_s26] sm:$0xff] }
   0xf   :  { %v5521_v1 = vld [vmem:[%s6581_s16] sm:$0xff] }
  0x10   :  { %26 = vsyncpa [#allocation3], 0  ;;  %4365 = vmatpush3.msra.mxu1 %v91_v0  ;;  %v5401_v3 = vmov 0.0|0.0   ;;  %4420 = vmatprep.mubr.msk.f32.mxu0 %vm5400_vm1, %v5399_v2  ;;  %v167_v4 = vld [vmem:[%s6557_s9] sm:$0xff]  ;;  %v168_v5 = vld [vmem:[%s6557_s9 + $0x8] sm:$0xff]  ;;  %vm176_vm2 = vcmask 130048  }
  0x11   :  { %5009 = vmatprep.subr.bf16.mxu0 %v5401_v3  ;;  %4367 = vmatmul.mubr.msk.f32.vlgmr.msra.gmra.mrb[0].mxu1 %vm93_vm0, %v5521_v1  ;;  %v5004_v6 = vpack.c.bf16 %v168_v5, %v167_v4  ;;  %v3918_v10 = vld [vmem:[%s6557_s9 + $0x10] sm:$0xff]  ;;  %v3919_v11 = vld [vmem:[%s6557_s9 + $0x18] sm:$0xff]  ;;  %v72_v13 = vld [vmem:[%s6556_s8] sm:$0xff]  ;;  %s6582_s22 = sld [smem:[#allocation8_spill]]  ;;  %s6583_s24 = sld [smem:[#allocation6_spill]]  ;;  %vm3825_vm3 = vcmask 261120  }
  0x12   :  { %5003 = vmatprep.subr.bf16.mxu1 %v5401_v3  ;;  %4373 = vmatprep.mubr.msk.f32.mxu1 %vm5400_vm1, %v5399_v2  ;;  %v5007_v12 = vpack.c.bf16 %v3919_v11, %v3918_v10  ;;  %v73_v14 = vld [vmem:[%s6556_s8 + $0x8] sm:$0xff]  ;;  %v74_v15 = vld [vmem:[%s6556_s8 + $0x10] sm:$0xff]  ;;  %v75_v17 = vld [vmem:[%s6556_s8 + $0x18] sm:$0xff]  ;;  %s6584_s30 = sld [smem:[#allocation10_spill]]  ;;  %s5404_s1 = smov [#allocation2]   ;;  %vm3899_vm4 = vcmask 58368  }
  0x13   :  { %5005 = vmatpush3.bf16.msra.mxu1 %v5004_v6  ;;  %v5560_v16 = vpack.c.bf16 %v73_v14, %v72_v13  ;;  %v5566_v18 = vpack.c.bf16 %v75_v17, %v74_v15  ;;  %v76_v19 = vld [vmem:[%s6556_s8 + $0x20] sm:$0xff]  ;;  %v77_v20 = vld [vmem:[%s6556_s8 + $0x28] sm:$0xff]  ;;  %v78_v22 = vld [vmem:[%s6556_s8 + $0x30] sm:$0xff]  ;;  %s3907_s2 = sshll.u32 %s5404_s1, 4  ;;  %s3908_s2 = int_to_ptr.vmem [resolvable:$true] %s3907_s2 }
  0x14   :  { %5006 = vmatprep.subr.bf16.mxu1 %v5401_v3  ;;  %v5576_v21 = vpack.c.bf16 %v77_v20, %v76_v19  ;;  %v79_v23 = vld [vmem:[%s6556_s8 + $0x38] sm:$0xff]  ;;  %v80_v25 = vld [vmem:[%s6556_s8 + $0x40] sm:$0xff]  ;;  %v81_v26 = vld [vmem:[%s6556_s8 + $0x48] sm:$0xff]  ;;  %p5380_p1 = scmp.lt.s32.totalorder %s3908_s2, %s3908_s2 }
  0x15   :  { %5011 = vmatpush3.bf16.msra.mxu0 %v5560_v16  ;;  %v5586_v24 = vpack.c.bf16 %v79_v23, %v78_v22  ;;  %v5596_v27 = vpack.c.bf16 %v81_v26, %v80_v25  ;;  %v82_v28 = vld [vmem:[%s6556_s8 + $0x50] sm:$0xff]  ;;  %v83_v29 = vld [vmem:[%s6556_s8 + $0x58] sm:$0xff]  ;;  %v3916_v31 = vld [vmem:[%s6558_s10] ss:$0 sm:$0xff] }
  0x16   :  { %5012 = vmatprep.subr.bf16.mxu0 %v5401_v3  ;;  %v5606_v30 = vpack.c.bf16 %v83_v29, %v82_v28  ;;  %v84_v37 = vld [vmem:[%s6556_s8 + $0x60] sm:$0xff]  ;;  %v85_v38 = vld [vmem:[%s6556_s8 + $0x68] sm:$0xff]  ;;  %v86_v40 = vld [vmem:[%s6556_s8 + $0x70] sm:$0xff] }
  0x17   :  { %v5617_v36 = vld [vmem:[%s6582_s22] sm:$0xff]  ;;  %v5634_v39 = vpack.c.bf16 %v85_v38, %v84_v37  ;;  %v87_v41 = vld [vmem:[%s6556_s8 + $0x78] sm:$0xff]  ;;  %v479_v44 = vld [vmem:[%s6559_s11 + $0x8] sm:$0xff]  ;;  %s5402_s8 = smov 112   ;;  %s5403_s22 = smov 96  }
  0x18   :  { %v5644_v42 = vpack.c.bf16 %v87_v41, %v86_v40  ;;  %v478_v43 = vld [vmem:[%s6559_s11] sm:$0xff]  ;;  %v480_v45 = vld [vmem:[%s6559_s11 + $0x10] sm:$0xff]  ;;  %v481_v47 = vld [vmem:[%s6559_s11 + $0x18] sm:$0xff] }
  0x19   :  { %5014 = vmatpush3.bf16.msra.mxu0 %v5566_v18  ;;  %v5034_v46 = vpack.c.bf16 %v479_v44, %v478_v43  ;;  %v5037_v48 = vpack.c.bf16 %v481_v47, %v480_v45  ;;  %v482_v49 = vld [vmem:[%s6559_s11 + $0x20] sm:$0xff]  ;;  %v483_v50 = vld [vmem:[%s6559_s11 + $0x28] sm:$0xff]  ;;  %v484_v52 = vld [vmem:[%s6559_s11 + $0x30] sm:$0xff] }
  0x1a   :  { %5015 = vmatprep.subr.bf16.mxu0 %v5401_v3  ;;  %v5040_v51 = vpack.c.bf16 %v483_v50, %v482_v49  ;;  %v485_v53 = vld [vmem:[%s6559_s11 + $0x38] sm:$0xff]  ;;  %v486_v55 = vld [vmem:[%s6559_s11 + $0x40] sm:$0xff]  ;;  %v487_v56 = vld [vmem:[%s6559_s11 + $0x48] sm:$0xff] }
  0x1b   :  { %v5043_v54 = vpack.c.bf16 %v485_v53, %v484_v52  ;;  %v5046_v57 = vpack.c.bf16 %v487_v56, %v486_v55  ;;  %v488_v58 = vld [vmem:[%s6559_s11 + $0x50] sm:$0xff]  ;;  %v489_v59 = vld [vmem:[%s6559_s11 + $0x58] sm:$0xff]  ;;  %v490_v61 = vld [vmem:[%s6559_s11 + $0x60] sm:$0xff] }
  0x1c   :  { %v5049_v60 = vpack.c.bf16 %v489_v59, %v488_v58  ;;  %v491_v62 = vld [vmem:[%s6559_s11 + $0x68] sm:$0xff]  ;;  %v5700_v5 = vld [vmem:[%s6555_s7] sm:$0xff]  ;;  %v493_v10 = vld [vmem:[%s6559_s11 + $0x78] sm:$0xff] }
  0x1d   :  { %5017 = vmatpush3.bf16.msra.mxu0 %v5576_v21  ;;  %v5052_v63 = vpack.c.bf16 %v491_v62, %v490_v61  ;;  %v3926_v13 = vld [vmem:[%s6559_s11 + $0x88] sm:$0xff]  ;;  %v3927_v14 = vld [vmem:[%s6559_s11 + $0x90] sm:$0xff]  ;;  %v3928_v17 = vld [vmem:[%s6559_s11 + $0x98] sm:$0xff] }
  0x1e   :  { %5018 = vmatprep.subr.bf16.mxu0 %v5401_v3  ;;  %v5061_v19 = vpack.c.bf16 %v3928_v17, %v3927_v14  ;;  %v3929_v20 = vld [vmem:[%s6559_s11 + $0xa0] sm:$0xff]  ;;  %v3930_v22 = vld [vmem:[%s6559_s11 + $0xa8] sm:$0xff]  ;;  %v3931_v25 = vld [vmem:[%s6559_s11 + $0xb0] sm:$0xff] }
  0x1f   :  { %v5064_v23 = vpack.c.bf16 %v3930_v22, %v3929_v20  ;;  %v3932_v26 = vld [vmem:[%s6559_s11 + $0xb8] sm:$0xff]  ;;  %v3933_v29 = vld [vmem:[%s6559_s11 + $0xc0] sm:$0xff]  ;;  %v3938_v38 = vld [vmem:[%s6559_s11 + $0xe8] sm:$0xff] }
  0x20   :  { %v5067_v28 = vpack.c.bf16 %v3932_v26, %v3931_v25  ;;  %v3937_v37 = vld [vmem:[%s6559_s11 + $0xe0] sm:$0xff]  ;;  %v90_v43 = vld [vmem:[%s6561_s13 + $0x8] sm:$0xff]  ;;  %v891_v14 = vld [vmem:[%s6562_s14 + $0x30] sm:$0xff] }
  0x21   :  { %5020 = vmatpush3.bf16.msra.mxu0 %v5586_v24  ;;  %v5076_v40 = vpack.c.bf16 %v3938_v38, %v3937_v37  ;;  %v89_v41 = vld [vmem:[%s6561_s13] sm:$0xff]  ;;  %v894_v20 = vld [vmem:[%s6562_s14 + $0x48] sm:$0xff]  ;;  %v896_v25 = vld [vmem:[%s6562_s14 + $0x58] sm:$0xff]  ;;  %s6586_s13 = sld [smem:[#allocation11_spill]] }
  0x22   :  { %5021 = vmatprep.subr.bf16.mxu0 %v5401_v3  ;;  %v5767_v47 = vpack.c.bf16 %v90_v43, %v89_v41  ;;  %v3921_v49 = vld [vmem:[%s6558_s10 + $0x1] ss:$0 sm:$0xff]  ;;  %v3924_v53 = vld [vmem:[%s6560_s12] ss:$0 sm:$0xff]  ;;  %v5913_v43 = vld [vmem:[%s6583_s24 + $0x8] sm:$0xff] }
  0x23   :  { %v3942_v61 = vld [vmem:[%s6560_s12 + $0x1] ss:$0 sm:$0xff] }
  0x24   :  { %v885_v62 = vld [vmem:[%s6562_s14] sm:$0xff] }
  0x25   :  { %5023 = vmatpush3.bf16.msra.mxu0 %v5596_v27 }
  0x26   :  { %5024 = vmatprep.subr.bf16.mxu0 %v5401_v3 }
  0x29   :  { %5026 = vmatpush3.bf16.msra.mxu0 %v5606_v30 }
  0x2a   :  { %5027 = vmatprep.subr.bf16.mxu0 %v5401_v3 }
  0x2d   :  { %5029 = vmatpush3.bf16.msra.mxu0 %v5634_v39 }
  0x2e   :  { %5030 = vmatprep.subr.bf16.mxu0 %v5401_v3 }
  0x31   :  { %5032 = vmatpush3.bf16.msra.mxu0 %v5644_v42 }
  0x32   :  { %5057 = vmatprep.subr.bf16.mxu0 %v5401_v3 }
  0xe4   :  { %v163_v7 = vpop.f32.mrb[0].mxu1 }
  0xe5   :  { %v164_v8 = vadd.f32 %v163_v7, %v91_v0  ;;  %v4368_v9 = vpop.f32.mrb[1].mxu1 }
  0xe6   :  { %v492_v9 = vld [vmem:[%s6559_s11 + $0x70] sm:$0xff] }
  0xe7   :  { %4374 = vmatmul.mubr.msk.f32.vlgmr.msra.gmra.mrb[2].mxu1 %vm176_vm2, %v164_v8  ;;  %v5055_v11 = vpack.c.bf16 %v493_v10, %v492_v9  ;;  %v888_v9 = vld [vmem:[%s6562_s14 + $0x18] sm:$0xff] }
  0xe8   :  { %4380 = vmatprep.mubr.msk.f32.mxu1 %vm5400_vm1, %v5399_v2  ;;  %5008 = vmatpush3.bf16.msra.mxu1 %v5007_v12  ;;  %v3925_v12 = vld [vmem:[%s6559_s11 + $0x80] sm:$0xff] }
  0xe9   :  { %4383 = vmatprep.subr.mxu1 %v5399_v2  ;;  %v5058_v15 = vpack.c.bf16 %v3926_v13, %v3925_v12  ;;  %v890_v12 = vld [vmem:[%s6562_s14 + $0x28] sm:$0xff] }
 0x1ba   :  { %v246_v32 = vpop.f32.mrb[2].mxu1 }
 0x1bb   :  { %v247_v33 = vadd.f32 %v3916_v31, %v246_v32  ;;  %v4375_v34 = vpop.f32.mrb[3].mxu1  ;;  %v3934_v31 = vld [vmem:[%s6559_s11 + $0xc8] sm:$0xff] }
 0x1bc   :  { %v5070_v32 = vpack.c.bf16 %v3934_v31, %v3933_v29  ;;  %v3936_v34 = vld [vmem:[%s6559_s11 + $0xd8] sm:$0xff]  ;;  %v898_v29 = vld [vmem:[%s6562_s14 + $0x68] sm:$0xff] }
 0x1bd   :  { %v250_v35 = vmax.f32 %v247_v33, 0.0  ;;  %v3935_v33 = vld [vmem:[%s6559_s11 + $0xd0] sm:$0xff] }
 0x1bf   :  { %4381 = vmatmul.mubr.msk.f32.vlgmr.msra.gmra.mrb[4].mxu1 %vm176_vm2, %v250_v35  ;;  %v5073_v35 = vpack.c.bf16 %v3936_v34, %v3935_v33  ;;  %v900_v33 = vld [vmem:[%s6562_s14 + $0x78] sm:$0xff] }
 0x1c0   :  { %4384 = vmatpush3.msra.mxu1 %v5617_v36  ;;  %4385 = vmatprep.mubr.msk.f32.mxu1 %vm5400_vm1, %v5399_v2 }
 0x1c1   :  { %5033 = vmatprep.subr.bf16.mxu1 %v5401_v3 }
 0x1c3   :  { %4386 = vmatmul.mubr.msk.f32.vlgmr.msra.gmra.mrb[6].mxu1 %vm93_vm0, %v5521_v1 }
 0x1c4   :  { %4455 = vmatprep.mubr.msk.f32.mxu1 %vm5400_vm1, %v5399_v2  ;;  %5035 = vmatpush3.bf16.msra.mxu1 %v5034_v46 }
 0x1c5   :  { %5036 = vmatprep.subr.bf16.mxu1 %v5401_v3 }
 0x1c8   :  { %5038 = vmatpush3.bf16.msra.mxu1 %v5037_v48 }
 0x1c9   :  { %5039 = vmatprep.subr.bf16.mxu1 %v5401_v3 }
 0x1cc   :  { %5041 = vmatpush3.bf16.msra.mxu1 %v5040_v51  ;;  %v3940_v51 = vld [vmem:[%s6559_s11 + $0xf8] sm:$0xff] }
 0x1cd   :  { %5042 = vmatprep.subr.bf16.mxu1 %v5401_v3 }
 0x1d0   :  { %5044 = vmatpush3.bf16.msra.mxu1 %v5043_v54 }
 0x1d1   :  { %5045 = vmatprep.subr.bf16.mxu1 %v5401_v3 }
 0x1d4   :  { %5047 = vmatpush3.bf16.msra.mxu1 %v5046_v57 }
 0x1d5   :  { %5048 = vmatprep.subr.bf16.mxu1 %v5401_v3 }
 0x1d8   :  { %5050 = vmatpush3.bf16.msra.mxu1 %v5049_v60  ;;  %v5798_v60 = vld [vmem:[%s6583_s24] sm:$0xff] }
 0x1d9   :  { %5051 = vmatprep.subr.bf16.mxu1 %v5401_v3 }
 0x1dc   :  { %5053 = vmatpush3.bf16.msra.mxu1 %v5052_v63  ;;  %v886_v63 = vld [vmem:[%s6562_s14 + $0x8] sm:$0xff] }
 0x1dd   :  { %5054 = vmatprep.subr.bf16.mxu1 %v5401_v3 }
 0x1e0   :  { %5056 = vmatpush3.bf16.msra.mxu1 %v5055_v11  ;;  %v889_v11 = vld [vmem:[%s6562_s14 + $0x20] sm:$0xff] }
 0x1e1   :  { %5081 = vmatprep.subr.bf16.mxu1 %v5401_v3  ;;  %v5842_v13 = vpack.c.bf16 %v890_v12, %v889_v11 }
 0x292   :  { %v331_v0 = vpop.f32.mrb[4].mxu1 }
 0x293   :  { %v4382_v4 = vpop.f32.mrb[5].mxu1  ;;  %v332_v50 = vadd.f32 %v3921_v49, %v331_v0  ;;  %v3952_v49 = vld [vmem:[%s6562_s14 + $0x98] sm:$0xff] }
 0x296   :  { %v401_v6 = vpop.f32.mrb[6].mxu1 }
 0x297   :  { %v405_v7 = vmul.f32 %v401_v6, %v5700_v5  ;;  %v4387_v8 = vpop.f32.mrb[7].mxu1 }
 0x298   :  { %v887_v8 = vld [vmem:[%s6562_s14 + $0x10] sm:$0xff] }
 0x299   :  { %4421 = vmatmul.mubr.f32.vlgmr.msra.gmra.mrb[0].mxu0 %v405_v7  ;;  %v5815_v7 = vpack.c.bf16 %v886_v63, %v885_v62  ;;  %v5829_v10 = vpack.c.bf16 %v888_v9, %v887_v8  ;;  %v3961_v63 = vld [vmem:[%s6562_s14 + $0xe0] sm:$0xff]  ;;  %v3963_v8 = vld [vmem:[%s6562_s14 + $0xf0] sm:$0xff]  ;;  %v3964_v9 = vld [vmem:[%s6562_s14 + $0xf8] sm:$0xff] }
 0x29a   :  { %4490 = vmatprep.mubr.msk.f32.mxu0 %vm5400_vm1, %v5399_v2  ;;  %5059 = vmatpush3.bf16.msra.mxu0 %v5058_v15  ;;  %v892_v15 = vld [vmem:[%s6562_s14 + $0x38] sm:$0xff]  ;;  %v6000_v11 = vpack.c.bf16 %v3964_v9, %v3963_v8 }
 0x29b   :  { %5060 = vmatprep.subr.bf16.mxu0 %v5401_v3  ;;  %v5852_v17 = vpack.c.bf16 %v892_v15, %v891_v14 }
 0x29e   :  { %5062 = vmatpush3.bf16.msra.mxu0 %v5061_v19  ;;  %v893_v19 = vld [vmem:[%s6562_s14 + $0x40] sm:$0xff] }
 0x29f   :  { %5063 = vmatprep.subr.bf16.mxu0 %v5401_v3  ;;  %v5862_v22 = vpack.c.bf16 %v894_v20, %v893_v19 }
 0x2a2   :  { %5065 = vmatpush3.bf16.msra.mxu0 %v5064_v23  ;;  %v895_v23 = vld [vmem:[%s6562_s14 + $0x50] sm:$0xff] }
 0x2a3   :  { %5066 = vmatprep.subr.bf16.mxu0 %v5401_v3  ;;  %v5872_v26 = vpack.c.bf16 %v896_v25, %v895_v23  ;;  %v3968_v25 = vld [vmem:[%s6562_s14 + $0x100] sm:$0xff] }
 0x2a6   :  { %5068 = vmatpush3.bf16.msra.mxu0 %v5067_v28  ;;  %v897_v28 = vld [vmem:[%s6562_s14 + $0x60] sm:$0xff] }
 0x2a7   :  { %5069 = vmatprep.subr.bf16.mxu0 %v5401_v3  ;;  %v5882_v31 = vpack.c.bf16 %v898_v29, %v897_v28  ;;  %v3969_v28 = vld [vmem:[%s6562_s14 + $0x108] sm:$0xff] }
 0x2a8   :  { %v6015_v29 = vpack.c.bf16 %v3969_v28, %v3968_v25  ;;  %v3987_v25 = vld [vmem:[%s6557_s9 + $0x28] sm:$0xff] }
 0x2aa   :  { %5071 = vmatpush3.bf16.msra.mxu0 %v5070_v32  ;;  %v899_v32 = vld [vmem:[%s6562_s14 + $0x70] sm:$0xff] }
 0x2ab   :  { %5072 = vmatprep.subr.bf16.mxu0 %v5401_v3  ;;  %v5892_v34 = vpack.c.bf16 %v900_v33, %v899_v32  ;;  %v3970_v32 = vld [vmem:[%s6562_s14 + $0x110] sm:$0xff]  ;;  %v3971_v33 = vld [vmem:[%s6562_s14 + $0x118] sm:$0xff] }
 0x2ae   :  { %5074 = vmatpush3.bf16.msra.mxu0 %v5073_v35  ;;  %v5900_v35 = vld [vmem:[%s6583_s24 + $0x10] sm:$0xff] }
 0x2af   :  { %5075 = vmatprep.subr.bf16.mxu0 %v5401_v3 }
 0x2b2   :  { %5077 = vmatpush3.bf16.msra.mxu0 %v5076_v40 }
 0x2b3   :  { %5078 = vmatprep.subr.bf16.mxu0 %v5401_v3 }
 0x36c   :  { %v472_v44 = vpop.f32.mrb[0].mxu0 }
 0x36d   :  { %v476_v45 = vadd.f32 %v472_v44, %v401_v6  ;;  %v4422_v46 = vpop.f32.mrb[1].mxu0  ;;  %v3949_v44 = vld [vmem:[%s6562_s14 + $0x80] sm:$0xff] }
 0x36f   :  { %v477_v48 = vadd.f32 %v476_v45, %v5617_v36  ;;  %v3939_v36 = vld [vmem:[%s6559_s11 + $0xf0] sm:$0xff]  ;;  %v3950_v45 = vld [vmem:[%s6562_s14 + $0x88] sm:$0xff] }
 0x370   :  { %v5079_v52 = vpack.c.bf16 %v3940_v51, %v3939_v36  ;;  %v5926_v46 = vpack.c.bf16 %v3950_v45, %v3949_v44  ;;  %v3953_v36 = vld [vmem:[%s6562_s14 + $0xa0] sm:$0xff]  ;;  %v3954_v51 = vld [vmem:[%s6562_s14 + $0xa8] sm:$0xff]  ;;  %v3974_v44 = vld [vmem:[%s6562_s14 + $0x130] sm:$0xff] }
 0x371   :  { %4456 = vmatmul.mubr.f32.vlgmr.msra.gmra.mrb[8].mxu1 %v477_v48  ;;  %v3951_v48 = vld [vmem:[%s6562_s14 + $0x90] sm:$0xff]  ;;  %v3975_v45 = vld [vmem:[%s6562_s14 + $0x138] sm:$0xff] }
 0x372   :  { %5083 = vmatpush3.bf16.msra.mxu1 %v5767_v47  ;;  %4497 = vmatprep.mubr.msk.f32.mxu1 %vm5400_vm1, %v5399_v2 }
 0x373   :  { %4500 = vmatprep.subr.mxu1 %v5399_v2  ;;  %5080 = vmatpush3.bf16.msra.mxu0 %v5079_v52  ;;  %v5950_v52 = vpack.c.bf16 %v3954_v51, %v3953_v36  ;;  %v3977_v36 = vld [vmem:[%s6562_s14 + $0x148] sm:$0xff] }
 0x374   :  { %4595 = vmatprep.subr.mxu0 %v5399_v2 }
 0x375   :  { %4498 = vmatmul.mubr.msk.f32.vlgmr.msra.gmra.mrb[10].mxu1 %vm176_vm2, %v332_v50  ;;  %v5938_v50 = vpack.c.bf16 %v3952_v49, %v3951_v48  ;;  %v6048_v48 = vpack.c.bf16 %v3975_v45, %v3974_v44  ;;  %v3976_v49 = vld [vmem:[%s6562_s14 + $0x140] sm:$0xff]  ;;  %v3991_v45 = vld [vmem:[%s6557_s9 + $0x30] sm:$0xff] }
 0x376   :  { %4502 = vmatprep.mubr.msk.f32.mxu1 %vm5400_vm1, %v5399_v2  ;;  %v6058_v51 = vpack.c.bf16 %v3977_v36, %v3976_v49  ;;  %v3992_v49 = vld [vmem:[%s6557_s9 + $0x38] sm:$0xff] }
 0x377   :  { %v5160_v36 = vpack.c.bf16 %v3992_v49, %v3991_v45  ;;  %v4008_v45 = vld [vmem:[%s6559_s11 + $0x158] sm:$0xff] }
 0x444   :  { %v567_v54 = vpop.f32.mrb[8].mxu1 }
 0x445   :  { %v568_v55 = vadd.f32 %v3924_v53, %v567_v54  ;;  %v4457_v56 = vpop.f32.mrb[9].mxu1  ;;  %v3955_v53 = vld [vmem:[%s6562_s14 + $0xb0] sm:$0xff]  ;;  %v3956_v54 = vld [vmem:[%s6562_s14 + $0xb8] sm:$0xff] }
 0x446   :  { %v3957_v56 = vld [vmem:[%s6562_s14 + $0xc0] sm:$0xff] }
 0x447   :  { %v571_v57 = vmax.f32 %v568_v55, 0.0  ;;  %v5960_v55 = vpack.c.bf16 %v3956_v54, %v3955_v53  ;;  %v3978_v53 = vld [vmem:[%s6562_s14 + $0x150] sm:$0xff]  ;;  %v3979_v54 = vld [vmem:[%s6562_s14 + $0x158] sm:$0xff] }
 0x448   :  { %v736_v58 = vpop.f32.mrb[10].mxu1 }
 0x449   :  { %4491 = vmatmul.mubr.f32.vlgmr.msra.gmra.mrb[2].mxu0 %v571_v57  ;;  %976 = vrot.lane.b32.xlu0 %v736_v58, %s5402_s8  ;;  %v4499_v59 = vpop.f32.mrb[11].mxu1  ;;  %v3958_v57 = vld [vmem:[%s6562_s14 + $0xc8] sm:$0xff] }
 0x44a   :  { %4501 = vmatpush3.msra.mxu1 %v736_v58  ;;  %4597 = vmatprep.mubr.msk.f32.mxu0 %vm5400_vm1, %v5399_v2  ;;  %v3959_v59 = vld [vmem:[%s6562_s14 + $0xd0] sm:$0xff] }
 0x44b   :  { %4505 = vmatprep.subr.mxu1 %v5399_v2  ;;  %4503 = vmatmul.mubr.msk.f32.vlgmr.msra.gmra.mrb[12].mxu1 %vm93_vm0, %v5798_v60 }
 0x44c   :  { %4507 = vmatprep.mubr.msk.f32.mxu1 %vm5400_vm1, %v5399_v2 }
 0x44d   :  { %1214 = vrot.lane.b32.xlu0 %v736_v58, %s5403_s22  ;;  %v5970_v58 = vpack.c.bf16 %v3958_v57, %v3957_v56  ;;  %v6068_v56 = vpack.c.bf16 %v3979_v54, %v3978_v53  ;;  %v3980_v57 = vld [vmem:[%s6562_s14 + $0x160] sm:$0xff] }
 0x44e   :  { %v3989_v53 = vld [vmem:[%s6558_s10 + $0x2] ss:$0 sm:$0xff] }
 0x4bb   :  { %v977_v41 = vpop.permute.xlu0 %976 }
 0x4bf   :  { %v1215_v23 = vpop.permute.xlu0 %1214 }
 0x51c   :  { %v663_v0 = vpop.f32.mrb[2].mxu0 }
 0x51d   :  { %v5813_v4 = vadd.f32 %v3942_v61, %v663_v0  ;;  %v4492_v6 = vpop.f32.mrb[3].mxu0  ;;  %v3960_v61 = vld [vmem:[%s6562_s14 + $0xd8] sm:$0xff]  ;;  %v3962_v0 = vld [vmem:[%s6562_s14 + $0xe8] sm:$0xff] }
 0x51e   :  { %v5980_v62 = vpack.c.bf16 %v3960_v61, %v3959_v59  ;;  %v5990_v6 = vpack.c.bf16 %v3962_v0, %v3961_v63  ;;  %v3981_v59 = vld [vmem:[%s6562_s14 + $0x168] sm:$0xff]  ;;  %v3982_v63 = vld [vmem:[%s6562_s14 + $0x170] sm:$0xff]  ;;  %v3983_v0 = vld [vmem:[%s6562_s14 + $0x178] sm:$0xff] }
 0x51f   :  { %4506 = vmatpush3.msra.mxu1 %v5813_v4  ;;  %4596 = vmatpush3.msra.mxu0 %v5813_v4  ;;  %v6078_v61 = vpack.c.bf16 %v3981_v59, %v3980_v57  ;;  %v6088_v8 = vpack.c.bf16 %v3983_v0, %v3982_v63  ;;  %v4000_v0 = vld [vmem:[%s6559_s11 + $0x118] sm:$0xff] }
 0x520   :  { %4508 = vmatmul.mubr.msk.f32.vlgmr.msra.gmra.mrb[14].mxu1 %vm93_vm0, %v5798_v60  ;;  %5084 = vmatprep.subr.bf16.mxu1 %v5401_v3 }
 0x521   :  { %5086 = vmatpush3.bf16.msra.mxu1 %v5815_v7  ;;  %4542 = vmatprep.mubr.msk.f32.mxu1 %vm5400_vm1, %v5399_v2 }
 0x522   :  { %5087 = vmatprep.subr.bf16.mxu1 %v5401_v3  ;;  %4635 = vmatprep.subr.mxu0 %v5399_v2 }
 0x523   :  { %4598 = vmatmul.mubr.msk.f32.vlgmr.msra.gmra.mrb[4].mxu0 %vm93_vm0, %v5900_v35 }
 0x524   :  { %4637 = vmatprep.mubr.msk.f32.mxu0 %vm5400_vm1, %v5399_v2 }
 0x525   :  { %5089 = vmatpush3.bf16.msra.mxu1 %v5829_v10 }
 0x526   :  { %5090 = vmatprep.subr.bf16.mxu1 %v5401_v3 }
 0x529   :  { %5092 = vmatpush3.bf16.msra.mxu1 %v5842_v13 }
 0x52a   :  { %5093 = vmatprep.subr.bf16.mxu1 %v5401_v3 }
 0x52d   :  { %5095 = vmatpush3.bf16.msra.mxu1 %v5852_v17 }
 0x52e   :  { %5096 = vmatprep.subr.bf16.mxu1 %v5401_v3 }
 0x531   :  { %5098 = vmatpush3.bf16.msra.mxu1 %v5862_v22 }
 0x532   :  { %5099 = vmatprep.subr.bf16.mxu1 %v5401_v3 }
 0x535   :  { %5101 = vmatpush3.bf16.msra.mxu1 %v5872_v26 }
 0x536   :  { %5102 = vmatprep.subr.bf16.mxu1 %v5401_v3 }
 0x539   :  { %5104 = vmatpush3.bf16.msra.mxu1 %v5882_v31 }
 0x53a   :  { %5105 = vmatprep.subr.bf16.mxu1 %v5401_v3 }
 0x53d   :  { %5107 = vmatpush3.bf16.msra.mxu1 %v5892_v34 }
 0x53e   :  { %4545 = vmatprep.subr.mxu1 %v5399_v2 }
 0x5f3   :  { %v880_v37 = vpop.f32.mrb[14].mxu1 }
 0x5f4   :  { %v884_v38 = vmul.f32 %v880_v37, %v5700_v5  ;;  %v4509_v40 = vpop.f32.mrb[15].mxu1  ;;  %v6026_v37 = vpack.c.bf16 %v3971_v33, %v3970_v32 }
 0x5f5   :  { %v3973_v40 = vld [vmem:[%s6562_s14 + $0x128] sm:$0xff] }
 0x5f6   :  { %4543 = vmatmul.mubr.f32.vlgmr.msra.gmra.mrb[12].mxu1 %v884_v38  ;;  %v1356_v12 = vpop.f32.mrb[4].mxu0  ;;  %v3972_v38 = vld [vmem:[%s6562_s14 + $0x120] sm:$0xff] }
 0x5f7   :  { %4546 = vmatpush3.msra.mxu1 %v977_v41  ;;  %4547 = vmatprep.mubr.msk.f32.mxu1 %vm5400_vm1, %v5399_v2  ;;  %v4599_v14 = vpop.f32.mrb[5].mxu0  ;;  %v6038_v41 = vpack.c.bf16 %v3973_v40, %v3972_v38  ;;  %v1360_v9 = vmul.f32 %v1356_v12, %v5700_v5  ;;  %v6105_v12 = vld [vmem:[%s6584_s30] sm:$0x3] }
 0x5f8   :  { %4550 = vmatprep.subr.mxu1 %v5399_v2  ;;  %v6099_v14 = vld [vmem:[%s6554_s6] sm:$0xff] }
 0x5fe   :  { %4548 = vmatmul.mubr.msk.f32.vlgmr.msra.gmra.mrb[12].mxu1 %vm93_vm0, %v5913_v43 }
 0x5ff   :  { %4551 = vmatpush3.msra.mxu1 %v5813_v4  ;;  %4552 = vmatprep.mubr.msk.f32.mxu1 %vm5400_vm1, %v5399_v2 }
 0x600   :  { %5108 = vmatprep.subr.bf16.mxu1 %v5401_v3 }
 0x602   :  { %4553 = vmatmul.mubr.msk.f32.vlgmr.msra.gmra.mrb[16].mxu1 %vm93_vm0, %v5913_v43 }
 0x603   :  { %5110 = vmatpush3.bf16.msra.mxu1 %v5926_v46  ;;  %4587 = vmatprep.mubr.msk.f32.mxu1 %vm5400_vm1, %v5399_v2 }
 0x604   :  { %5111 = vmatprep.subr.bf16.mxu1 %v5401_v3 }
 0x607   :  { %5113 = vmatpush3.bf16.msra.mxu1 %v5938_v50 }
 0x608   :  { %5114 = vmatprep.subr.bf16.mxu1 %v5401_v3 }
 0x60b   :  { %5116 = vmatpush3.bf16.msra.mxu1 %v5950_v52 }
 0x60c   :  { %5117 = vmatprep.subr.bf16.mxu1 %v5401_v3 }
 0x60f   :  { %5119 = vmatpush3.bf16.msra.mxu1 %v5960_v55 }
 0x610   :  { %5120 = vmatprep.subr.bf16.mxu1 %v5401_v3 }
 0x613   :  { %5122 = vmatpush3.bf16.msra.mxu1 %v5970_v58 }
 0x614   :  { %5123 = vmatprep.subr.bf16.mxu1 %v5401_v3 }
 0x617   :  { %5125 = vmatpush3.bf16.msra.mxu1 %v5980_v62 }
 0x618   :  { %5126 = vmatprep.subr.bf16.mxu1 %v5401_v3 }
 0x61b   :  { %5128 = vmatpush3.bf16.msra.mxu1 %v5990_v6 }
 0x61c   :  { %5129 = vmatprep.subr.bf16.mxu1 %v5401_v3 }
 0x61f   :  { %5131 = vmatpush3.bf16.msra.mxu1 %v6000_v11 }
 0x620   :  { %4590 = vmatprep.subr.mxu1 %v5399_v2 }
 0x6d5   :  { %v1118_v15 = vpop.f32.mrb[16].mxu1 }
 0x6d6   :  { %v1122_v19 = vmul.f32 %v1118_v15, %v5700_v5  ;;  %v4554_v20 = vpop.f32.mrb[17].mxu1 }
 0x6d8   :  { %4588 = vmatmul.mubr.f32.vlgmr.msra.gmra.mrb[12].mxu1 %v1122_v19 }
 0x6d9   :  { %4591 = vmatpush3.msra.mxu1 %v1215_v23  ;;  %4592 = vmatprep.mubr.msk.f32.mxu1 %vm5400_vm1, %v5399_v2  ;;  %v3986_v23 = vld [vmem:[%s6557_s9 + $0x20] sm:$0xff] }
 0x6da   :  { %5132 = vmatprep.subr.bf16.mxu1 %v5401_v3  ;;  %v5157_v28 = vpack.c.bf16 %v3987_v25, %v3986_v23  ;;  %v4003_v23 = vld [vmem:[%s6559_s11 + $0x130] sm:$0xff]  ;;  %v4004_v25 = vld [vmem:[%s6559_s11 + $0x138] sm:$0xff] }
 0x6e0   :  { %4593 = vmatmul.mubr.msk.f32.vlgmr.msra.gmra.mrb[12].mxu1 %vm93_vm0, %v5900_v35 }
 0x6e1   :  { %5134 = vmatpush3.bf16.msra.mxu1 %v6015_v29  ;;  %4632 = vmatprep.mubr.msk.f32.mxu1 %vm5400_vm1, %v5399_v2 }
 0x6e2   :  { %5135 = vmatprep.subr.bf16.mxu1 %v5401_v3 }
 0x6e5   :  { %5137 = vmatpush3.bf16.msra.mxu1 %v6026_v37 }
 0x6e6   :  { %5138 = vmatprep.subr.bf16.mxu1 %v5401_v3 }
 0x6e9   :  { %5140 = vmatpush3.bf16.msra.mxu1 %v6038_v41 }
 0x6ea   :  { %5141 = vmatprep.subr.bf16.mxu1 %v5401_v3 }
 0x6ed   :  { %5143 = vmatpush3.bf16.msra.mxu1 %v6048_v48 }
 0x6ee   :  { %5144 = vmatprep.subr.bf16.mxu1 %v5401_v3 }
 0x6f1   :  { %5146 = vmatpush3.bf16.msra.mxu1 %v6058_v51 }
 0x6f2   :  { %5147 = vmatprep.subr.bf16.mxu1 %v5401_v3 }
 0x6f5   :  { %5149 = vmatpush3.bf16.msra.mxu1 %v6068_v56 }
 0x6f6   :  { %5150 = vmatprep.subr.bf16.mxu1 %v5401_v3 }
 0x6f9   :  { %5152 = vmatpush3.bf16.msra.mxu1 %v6078_v61 }
 0x6fa   :  { %5153 = vmatprep.subr.bf16.mxu1 %v5401_v3 }
 0x6fd   :  { %5155 = vmatpush3.bf16.msra.mxu1 %v6088_v8 }
 0x6fe   :  { %5210 = vmatprep.subr.bf16.mxu1 %v5401_v3 }
 0x700   :  { %4633 = vmatmul.mubr.f32.vlgmr.msra.gmra.mrb[12].mxu1 %v1360_v9 }
 0x701   :  { %4766 = vmatprep.mubr.msk.f32.mxu1 %vm5400_vm1, %v5399_v2 }
 0x7d3   :  { %v1444_v15 = vpop.f32.mrb[12].mxu1 }
 0x7d4   :  { %v5339_v19 = vadd.f32 %v1444_v15, %v6099_v14  ;;  %v4634_v20 = vpop.f32.mrb[13].mxu1  ;;  %v4001_v15 = vld [vmem:[%s6559_s11 + $0x120] sm:$0xff] }
 0x7d6   :  { %4636 = vmatpush3.msra.mxu0 %v5339_v19 }
 0x7d7   :  { %4638 = vmatmul.mubr.msk.f32.vlgmr.msra.gmra.mrb[6].mxu0 %vm93_vm0, %v6105_v12  ;;  %4640 = vmatprep.subr.mxu0 %v5399_v2 }
 0x7d8   :  { %4641 = vmatpush3.msra.mxu0 %v5339_v19  ;;  %4642 = vmatprep.mubr.msk.f32.mxu0 %vm5400_vm1, %v5399_v2 }
 0x7d9   :  { %5156 = vmatprep.subr.bf16.mxu0 %v5401_v3 }
 0x7db   :  { %4643 = vmatmul.mubr.msk.f32.vlgmr.msra.gmra.mrb[8].mxu0 %vm93_vm0, %v5521_v1 }
 0x7dc   :  { %4649 = vmatprep.mubr.msk.f32.mxu0 %vm5400_vm1, %v5399_v2  ;;  %5158 = vmatpush3.bf16.msra.mxu0 %v5157_v28  ;;  %v5196_v28 = vpack.c.bf16 %v4004_v25, %v4003_v23  ;;  %v4023_v23 = vld [vmem:[%s6559_s11 + $0x1c0] sm:$0xff]  ;;  %v4024_v25 = vld [vmem:[%s6559_s11 + $0x1c8] sm:$0xff] }
 0x7dd   :  { %5159 = vmatprep.subr.bf16.mxu0 %v5401_v3 }
 0x8aa   :  { %v6124_v32 = vpop.f32.mrb[6].mxu0 }
 0x8ab   :  { %v4639_v33 = vpop.f32.mrb[7].mxu0 }
 0x8ac   :  { %v4005_v33 = vld [vmem:[%s6559_s11 + $0x140] sm:$0xff] }
 0x8ae   :  { %v1589_v38 = vpop.f32.mrb[8].mxu0 }
 0x8af   :  { %v1590_v40 = vadd.f32 %v5339_v19, %v1589_v38  ;;  %v4644_v44 = vpop.f32.mrb[9].mxu0  ;;  %v4002_v19 = vld [vmem:[%s6559_s11 + $0x128] sm:$0xff] }
 0x8b0   :  { %v5193_v20 = vpack.c.bf16 %v4002_v19, %v4001_v15  ;;  %v4006_v38 = vld [vmem:[%s6559_s11 + $0x148] sm:$0xff]  ;;  %v4007_v44 = vld [vmem:[%s6559_s11 + $0x150] sm:$0xff]  ;;  %v4022_v19 = vld [vmem:[%s6559_s11 + $0x1b8] sm:$0xff] }
 0x8b1   :  { %4650 = vmatmul.mubr.msk.f32.vlgmr.msra.gmra.mrb[10].mxu0 %vm176_vm2, %v1590_v40  ;;  %v5199_v40 = vpack.c.bf16 %v4006_v38, %v4005_v33  ;;  %v5202_v49 = vpack.c.bf16 %v4008_v45, %v4007_v44  ;;  %v4021_v15 = vld [vmem:[%s6559_s11 + $0x1b0] sm:$0xff]  ;;  %v4026_v38 = vld [vmem:[%s6559_s11 + $0x1d8] sm:$0xff]  ;;  %v4027_v44 = vld [vmem:[%s6559_s11 + $0x1e0] sm:$0xff] }
 0x8b2   :  { %4656 = vmatprep.mubr.msk.f32.mxu0 %vm5400_vm1, %v5399_v2  ;;  %5161 = vmatpush3.bf16.msra.mxu0 %v5160_v36  ;;  %v4009_v36 = vld [vmem:[%s6559_s11 + $0x160] sm:$0xff]  ;;  %v4025_v33 = vld [vmem:[%s6559_s11 + $0x1d0] sm:$0xff]  ;;  %v4028_v45 = vld [vmem:[%s6559_s11 + $0x1e8] sm:$0xff] }
 0x8b3   :  { %4659 = vmatprep.subr.mxu0 %v5399_v2 }
 0x984   :  { %v1673_v54 = vpop.f32.mrb[10].mxu0 }
 0x985   :  { %v1674_v57 = vadd.f32 %v3989_v53, %v1673_v54  ;;  %v4651_v59 = vpop.f32.mrb[11].mxu0  ;;  %v4010_v53 = vld [vmem:[%s6559_s11 + $0x168] sm:$0xff] }
 0x986   :  { %v5205_v54 = vpack.c.bf16 %v4010_v53, %v4009_v36  ;;  %v4012_v59 = vld [vmem:[%s6559_s11 + $0x178] sm:$0xff] }
 0x987   :  { %v1677_v63 = vmax.f32 %v1674_v57, 0.0  ;;  %v4011_v57 = vld [vmem:[%s6559_s11 + $0x170] sm:$0xff] }
 0x989   :  { %4657 = vmatmul.mubr.msk.f32.vlgmr.msra.gmra.mrb[12].mxu0 %vm176_vm2, %v1677_v63  ;;  %v5208_v63 = vpack.c.bf16 %v4012_v59, %v4011_v57  ;;  %v3994_v59 = vld [vmem:[%s6558_s10 + $0x3] ss:$0 sm:$0xff] }
 0x98a   :  { %4660 = vmatpush3.msra.mxu0 %v5813_v4  ;;  %4661 = vmatprep.mubr.msk.f32.mxu0 %vm5400_vm1, %v5399_v2 }
 0x98b   :  { %5162 = vmatprep.subr.bf16.mxu0 %v5401_v3 }
 0x98d   :  { %4662 = vmatmul.mubr.msk.f32.vlgmr.msra.gmra.mrb[14].mxu0 %vm93_vm0, %v5521_v1 }
 0x98e   :  { %5164 = vmatpush3.bf16.msra.mxu0 %v5560_v16  ;;  %4696 = vmatprep.mubr.msk.f32.mxu0 %vm5400_vm1, %v5399_v2 }
 0x98f   :  { %5165 = vmatprep.subr.bf16.mxu0 %v5401_v3 }
 0x992   :  { %5167 = vmatpush3.bf16.msra.mxu0 %v5566_v18  ;;  %v3997_v18 = vld [vmem:[%s6559_s11 + $0x100] sm:$0xff] }
 0x993   :  { %5168 = vmatprep.subr.bf16.mxu0 %v5401_v3 }
 0x996   :  { %5170 = vmatpush3.bf16.msra.mxu0 %v5576_v21  ;;  %v3998_v21 = vld [vmem:[%s6559_s11 + $0x108] sm:$0xff] }
 0x997   :  { %5171 = vmatprep.subr.bf16.mxu0 %v5401_v3 }
 0x99a   :  { %5173 = vmatpush3.bf16.msra.mxu0 %v5586_v24 }
 0x99b   :  { %5174 = vmatprep.subr.bf16.mxu0 %v5401_v3 }
 0x99e   :  { %5176 = vmatpush3.bf16.msra.mxu0 %v5596_v27  ;;  %v5187_v27 = vpack.c.bf16 %v3998_v21, %v3997_v18  ;;  %v4016_v18 = vld [vmem:[%s6559_s11 + $0x188] sm:$0xff]  ;;  %v4017_v21 = vld [vmem:[%s6559_s11 + $0x190] sm:$0xff] }
 0x99f   :  { %5177 = vmatprep.subr.bf16.mxu0 %v5401_v3 }
 0x9a2   :  { %5179 = vmatpush3.bf16.msra.mxu0 %v5606_v30 }
 0x9a3   :  { %5180 = vmatprep.subr.bf16.mxu0 %v5401_v3 }
 0x9a6   :  { %5182 = vmatpush3.bf16.msra.mxu0 %v5634_v39 }
 0x9a7   :  { %5183 = vmatprep.subr.bf16.mxu0 %v5401_v3 }
 0x9aa   :  { %5185 = vmatpush3.bf16.msra.mxu0 %v5644_v42  ;;  %v3999_v42 = vld [vmem:[%s6559_s11 + $0x110] sm:$0xff] }
 0x9ab   :  { %5186 = vmatprep.subr.bf16.mxu0 %v5401_v3  ;;  %v5190_v9 = vpack.c.bf16 %v4000_v0, %v3999_v42  ;;  %v4019_v42 = vld [vmem:[%s6559_s11 + $0x1a0] sm:$0xff]  ;;  %v4020_v0 = vld [vmem:[%s6559_s11 + $0x1a8] sm:$0xff] }
 0xa5c   :  { %v6164_v1 = vpop.f32.mrb[12].mxu0 }
 0xa5d   :  { %v4658_v16 = vpop.f32.mrb[13].mxu0 }
 0xa5e   :  { %v4015_v16 = vld [vmem:[%s6559_s11 + $0x180] sm:$0xff] }
 0xa60   :  { %v6172_v24 = vpop.f32.mrb[14].mxu0 }
 0xa61   :  { %v1832_v30 = vmul.f32 %v6172_v24, %v5700_v5  ;;  %v4663_v39 = vpop.f32.mrb[15].mxu0 }
 0xa63   :  { %4697 = vmatmul.mubr.f32.vlgmr.msra.gmra.mrb[16].mxu0 %v1832_v30  ;;  %v4018_v30 = vld [vmem:[%s6559_s11 + $0x198] sm:$0xff] }
 0xa64   :  { %5188 = vmatpush3.bf16.msra.mxu0 %v5187_v27  ;;  %4731 = vmatprep.mubr.msk.f32.mxu0 %vm5400_vm1, %v5399_v2  ;;  %v5211_v27 = vpack.c.bf16 %v4016_v18, %v4015_v16  ;;  %v5214_v39 = vpack.c.bf16 %v4018_v30, %v4017_v21 }
 0xa65   :  { %5189 = vmatprep.subr.bf16.mxu0 %v5401_v3 }
 0xa66   :  { %5212 = vmatpush3.bf16.msra.mxu1 %v5211_v27 }
 0xa67   :  { %5213 = vmatprep.subr.bf16.mxu1 %v5401_v3 }
 0xa68   :  { %5191 = vmatpush3.bf16.msra.mxu0 %v5190_v9  ;;  %v5217_v9 = vpack.c.bf16 %v4020_v0, %v4019_v42  ;;  %v4032_v42 = vld [vmem:[%s6560_s12 + $0x3] ss:$0 sm:$0xff] }
 0xa69   :  { %5192 = vmatprep.subr.bf16.mxu0 %v5401_v3 }
 0xa6a   :  { %5215 = vmatpush3.bf16.msra.mxu1 %v5214_v39 }
 0xa6b   :  { %5216 = vmatprep.subr.bf16.mxu1 %v5401_v3 }
 0xa6c   :  { %5194 = vmatpush3.bf16.msra.mxu0 %v5193_v20  ;;  %v5220_v20 = vpack.c.bf16 %v4022_v19, %v4021_v15 }
 0xa6d   :  { %5195 = vmatprep.subr.bf16.mxu0 %v5401_v3 }
 0xa6e   :  { %5218 = vmatpush3.bf16.msra.mxu1 %v5217_v9 }
 0xa6f   :  { %5219 = vmatprep.subr.bf16.mxu1 %v5401_v3 }
 0xa70   :  { %5197 = vmatpush3.bf16.msra.mxu0 %v5196_v28  ;;  %v5223_v28 = vpack.c.bf16 %v4024_v25, %v4023_v23  ;;  %v4047_v25 = vld [vmem:[%s6586_s13 + $0x1] ss:$0 sm:$0xff] }
 0xa71   :  { %5198 = vmatprep.subr.bf16.mxu0 %v5401_v3 }
 0xa72   :  { %5221 = vmatpush3.bf16.msra.mxu1 %v5220_v20 }
 0xa73   :  { %5222 = vmatprep.subr.bf16.mxu1 %v5401_v3 }
 0xa74   :  { %5200 = vmatpush3.bf16.msra.mxu0 %v5199_v40  ;;  %v5226_v40 = vpack.c.bf16 %v4026_v38, %v4025_v33 }
 0xa75   :  { %5201 = vmatprep.subr.bf16.mxu0 %v5401_v3 }
 0xa76   :  { %5224 = vmatpush3.bf16.msra.mxu1 %v5223_v28 }
 0xa77   :  { %5225 = vmatprep.subr.bf16.mxu1 %v5401_v3 }
 0xa78   :  { %5203 = vmatpush3.bf16.msra.mxu0 %v5202_v49  ;;  %v5229_v49 = vpack.c.bf16 %v4028_v45, %v4027_v44  ;;  %v4052_v44 = vld [vmem:[%s6563_s15 + $0x28] sm:$0xff] }
 0xa79   :  { %5204 = vmatprep.subr.bf16.mxu0 %v5401_v3 }
 0xa7a   :  { %5227 = vmatpush3.bf16.msra.mxu1 %v5226_v40  ;;  %v4051_v40 = vld [vmem:[%s6563_s15 + $0x20] sm:$0xff] }
 0xa7b   :  { %5228 = vmatprep.subr.bf16.mxu1 %v5401_v3  ;;  %v5316_v45 = vpack.c.bf16 %v4052_v44, %v4051_v40 }
 0xa7c   :  { %5206 = vmatpush3.bf16.msra.mxu0 %v5205_v54 }
 0xa7d   :  { %5207 = vmatprep.subr.bf16.mxu0 %v5401_v3 }
 0xa7e   :  { %5230 = vmatpush3.bf16.msra.mxu1 %v5229_v49 }
 0xa7f   :  { %5231 = vmatprep.subr.bf16.mxu1 %v5401_v3 }
 0xa80   :  { %5209 = vmatpush3.bf16.msra.mxu0 %v5208_v63  ;;  %v1759_v63 = vadd.f32 %v3994_v59, %v6164_v1  ;;  %v4014_v1 = vld [vmem:[%s6560_s12 + $0x2] ss:$0 sm:$0xff]  ;;  %v4056_v59 = vld [vmem:[%s6563_s15 + $0x30] sm:$0xff] }
 0xa81   :  { %5234 = vmatprep.subr.bf16.mxu0 %v5401_v3 }
 0xb36   :  { %v1899_v36 = vpop.f32.mrb[16].mxu0 }
 0xb37   :  { %v1903_v53 = vadd.f32 %v1899_v36, %v6172_v24  ;;  %v4698_v54 = vpop.f32.mrb[17].mxu0 }
 0xb39   :  { %v1904_v57 = vadd.f32 %v1903_v53, %v5813_v4  ;;  %v4029_v4 = vld [vmem:[%s6559_s11 + $0x1f0] sm:$0xff] }
 0xb3b   :  { %4732 = vmatmul.mubr.f32.vlgmr.msra.gmra.mrb[18].mxu0 %v1904_v57 }
 0xb3c   :  { %5236 = vmatpush3.bf16.msra.mxu0 %v5767_v47  ;;  %4773 = vmatprep.mubr.msk.f32.mxu0 %vm5400_vm1, %v5399_v2  ;;  %v4030_v47 = vld [vmem:[%s6559_s11 + $0x1f8] sm:$0xff] }
 0xb3d   :  { %4776 = vmatprep.subr.mxu0 %v5399_v2  ;;  %v5232_v24 = vpack.c.bf16 %v4030_v47, %v4029_v4  ;;  %v4054_v47 = vld [vmem:[%s6586_s13 + $0x2] ss:$0 sm:$0xff] }
 0xb3f   :  { %4774 = vmatmul.mubr.msk.f32.vlgmr.msra.gmra.mrb[20].mxu0 %vm176_vm2, %v1759_v63  ;;  %5233 = vmatpush3.bf16.msra.mxu1 %v5232_v24  ;;  %v4057_v63 = vld [vmem:[%s6563_s15 + $0x38] sm:$0xff] }
 0xb40   :  { %4778 = vmatprep.mubr.msk.f32.mxu0 %vm5400_vm1, %v5399_v2  ;;  %4826 = vmatprep.subr.mxu1 %v5399_v2  ;;  %v5319_v4 = vpack.c.bf16 %v4057_v63, %v4056_v59 }
 0xc0e   :  { %v1996_v16 = vpop.f32.mrb[18].mxu0 }
 0xc0f   :  { %v1997_v18 = vadd.f32 %v4014_v1, %v1996_v16  ;;  %v4733_v21 = vpop.f32.mrb[19].mxu0 }
 0xc10   :  { %v4059_v21 = vld [vmem:[%s6586_s13 + $0x3] ss:$0 sm:$0xff] }
 0xc11   :  { %v2000_v27 = vmax.f32 %v1997_v18, 0.0 }
 0xc12   :  { %v2165_v30 = vpop.f32.mrb[20].mxu0 }
 0xc13   :  { %4767 = vmatmul.mubr.f32.vlgmr.msra.gmra.mrb[18].mxu1 %v2000_v27  ;;  %2383 = vrot.lane.b32.xlu1 %v2165_v30, %s5402_s8  ;;  %v4775_v39 = vpop.f32.mrb[21].mxu0  ;;  %v3502_v27 = vld [vmem:[%s6565_s17] sm:$0xff] }
 0xc14   :  { %4777 = vmatpush3.msra.mxu0 %v2165_v30  ;;  %4828 = vmatprep.mubr.msk.f32.mxu1 %vm5400_vm1, %v5399_v2 }
 0xc15   :  { %4779 = vmatmul.mubr.msk.f32.vlgmr.msra.gmra.mrb[22].mxu0 %vm93_vm0, %v5798_v60  ;;  %4781 = vmatprep.subr.mxu0 %v5399_v2 }
 0xc16   :  { %4783 = vmatprep.mubr.msk.f32.mxu0 %vm5400_vm1, %v5399_v2 }
 0xc17   :  { %2599 = vrot.lane.b32.xlu1 %v2165_v30, %s5403_s22  ;;  %s6585_s22 = sld [smem:[#allocation9_spill]]  ;;  %v3503_v30 = vld [vmem:[%s6565_s17 + $0x8] sm:$0xff] }
 0xce6   :  { %v2092_v0 = vpop.f32.mrb[18].mxu1 }
 0xce7   :  { %v2093_v9 = vadd.f32 %v4032_v42, %v2092_v0  ;;  %v4768_v15 = vpop.f32.mrb[19].mxu1 }
 0xce8   :  { %v3504_v15 = vld [vmem:[%s6565_s17 + $0x10] sm:$0xff] }
 0xce9   :  { %4782 = vmatpush3.msra.mxu0 %v2093_v9  ;;  %4827 = vmatpush3.msra.mxu1 %v2093_v9 }
 0xcea   :  { %4784 = vmatmul.mubr.msk.f32.vlgmr.msra.gmra.mrb[24].mxu0 %vm93_vm0, %v5798_v60  ;;  %4871 = vmatprep.subr.mxu1 %v5399_v2 }
 0xceb   :  { %4829 = vmatmul.mubr.msk.f32.vlgmr.msra.gmra.mrb[20].mxu1 %vm93_vm0, %v5913_v43  ;;  %5237 = vmatprep.subr.bf16.mxu0 %v5401_v3 }
 0xcec   :  { %4872 = vmatpush3.msra.mxu1 %v2093_v9  ;;  %4873 = vmatprep.mubr.msk.f32.mxu1 %vm5400_vm1, %v5399_v2  ;;  %v5322_v9 = vpack.c.bf16 %v3503_v30, %v3502_v27 }
 0xced   :  { %5239 = vmatpush3.bf16.msra.mxu0 %v5815_v7  ;;  %4818 = vmatprep.mubr.msk.f32.mxu0 %vm5400_vm1, %v5399_v2 }
 0xcee   :  { %5240 = vmatprep.subr.bf16.mxu0 %v5401_v3  ;;  %4911 = vmatprep.subr.mxu1 %v5399_v2 }
 0xcef   :  { %4874 = vmatmul.mubr.msk.f32.vlgmr.msra.gmra.mrb[22].mxu1 %vm93_vm0, %v5900_v35 }
 0xcf0   :  { %4913 = vmatprep.mubr.msk.f32.mxu1 %vm5400_vm1, %v5399_v2 }
 0xcf1   :  { %5242 = vmatpush3.bf16.msra.mxu0 %v5829_v10 }
 0xcf2   :  { %5243 = vmatprep.subr.bf16.mxu0 %v5401_v3 }
 0xcf5   :  { %5245 = vmatpush3.bf16.msra.mxu0 %v5842_v13 }
 0xcf6   :  { %5246 = vmatprep.subr.bf16.mxu0 %v5401_v3 }
 0xcf9   :  { %5248 = vmatpush3.bf16.msra.mxu0 %v5852_v17 }
 0xcfa   :  { %5249 = vmatprep.subr.bf16.mxu0 %v5401_v3 }
 0xcfd   :  { %5251 = vmatpush3.bf16.msra.mxu0 %v5862_v22  ;;  %v2384_v22 = vpop.permute.xlu1 %2383 }
 0xcfe   :  { %5252 = vmatprep.subr.bf16.mxu0 %v5401_v3 }
 0xd01   :  { %5254 = vmatpush3.bf16.msra.mxu0 %v5872_v26 }
 0xd02   :  { %5255 = vmatprep.subr.bf16.mxu0 %v5401_v3 }
 0xd05   :  { %5257 = vmatpush3.bf16.msra.mxu0 %v5882_v31 }
 0xd06   :  { %5258 = vmatprep.subr.bf16.mxu0 %v5401_v3 }
 0xd09   :  { %5260 = vmatpush3.bf16.msra.mxu0 %v5892_v34 }
 0xd0a   :  { %4821 = vmatprep.subr.mxu0 %v5399_v2 }
 0xdbd   :  { %v2305_v60 = vpop.f32.mrb[24].mxu0 }
 0xdbe   :  { %v2309_v7 = vmul.f32 %v2305_v60, %v5700_v5  ;;  %v4785_v10 = vpop.f32.mrb[25].mxu0  ;;  %v2522_v13 = vpop.f32.mrb[20].mxu1  ;;  %v3505_v60 = vld [vmem:[%s6565_s17 + $0x18] sm:$0xff] }
 0xdbf   :  { %v4830_v17 = vpop.f32.mrb[21].mxu1  ;;  %v2526_v34 = vmul.f32 %v2522_v13, %v5700_v5  ;;  %v3507_v10 = vld [vmem:[%s6565_s17 + $0x28] sm:$0xff] }
 0xdc0   :  { %4819 = vmatmul.mubr.f32.vlgmr.msra.gmra.mrb[22].mxu0 %v2309_v7  ;;  %v5325_v7 = vpack.c.bf16 %v3505_v60, %v3504_v15 }
 0xdc1   :  { %4822 = vmatpush3.msra.mxu0 %v2384_v22  ;;  %4823 = vmatprep.mubr.msk.f32.mxu0 %vm5400_vm1, %v5399_v2 }
 0xdc2   :  { %5261 = vmatprep.subr.bf16.mxu0 %v5401_v3  ;;  %v2738_v26 = vpop.f32.mrb[22].mxu1 }
 0xdc3   :  { %v4875_v31 = vpop.f32.mrb[23].mxu1 }
 0xdc4   :  { %v3509_v31 = vld [vmem:[%s6565_s17 + $0x38] sm:$0xff] }
 0xdc8   :  { %4824 = vmatmul.mubr.msk.f32.vlgmr.msra.gmra.mrb[22].mxu0 %vm93_vm0, %v5913_v43  ;;  %v2600_v43 = vpop.permute.xlu1 %2599 }
 0xdc9   :  { %5263 = vmatpush3.bf16.msra.mxu0 %v5926_v46  ;;  %4863 = vmatprep.mubr.msk.f32.mxu0 %vm5400_vm1, %v5399_v2 }
 0xdca   :  { %5264 = vmatprep.subr.bf16.mxu0 %v5401_v3 }
 0xdcd   :  { %5266 = vmatpush3.bf16.msra.mxu0 %v5938_v50 }
 0xdce   :  { %5267 = vmatprep.subr.bf16.mxu0 %v5401_v3 }
 0xdd1   :  { %5269 = vmatpush3.bf16.msra.mxu0 %v5950_v52 }
 0xdd2   :  { %5270 = vmatprep.subr.bf16.mxu0 %v5401_v3 }
 0xdd5   :  { %5272 = vmatpush3.bf16.msra.mxu0 %v5960_v55  ;;  %v2885_v55 = vld [vmem:[%s6585_s22] sm:$0xff] }
 0xdd6   :  { %5273 = vmatprep.subr.bf16.mxu0 %v5401_v3 }
 0xdd9   :  { %5275 = vmatpush3.bf16.msra.mxu0 %v5970_v58  ;;  %v2956_v58 = vld [vmem:[%s6563_s15] sm:$0xff] }
 0xdda   :  { %5276 = vmatprep.subr.bf16.mxu0 %v5401_v3 }
 0xddd   :  { %5278 = vmatpush3.bf16.msra.mxu0 %v5980_v62  ;;  %v2957_v62 = vld [vmem:[%s6563_s15 + $0x8] sm:$0xff] }
 0xdde   :  { %5279 = vmatprep.subr.bf16.mxu0 %v5401_v3 }
 0xde1   :  { %5281 = vmatpush3.bf16.msra.mxu0 %v5990_v6  ;;  %v5310_v6 = vpack.c.bf16 %v2957_v62, %v2956_v58 }
 0xde2   :  { %5282 = vmatprep.subr.bf16.mxu0 %v5401_v3 }
 0xde5   :  { %5284 = vmatpush3.bf16.msra.mxu0 %v6000_v11 }
 0xde6   :  { %4866 = vmatprep.subr.mxu0 %v5399_v2 }
 0xde8   :  { %4864 = vmatmul.mubr.f32.vlgmr.msra.gmra.mrb[22].mxu0 %v2526_v34 }
 0xde9   :  { %4867 = vmatpush3.msra.mxu0 %v2600_v43  ;;  %4868 = vmatprep.mubr.msk.f32.mxu0 %vm5400_vm1, %v5399_v2  ;;  %v3814_v43 = vld [vmem:[%s6567_s19] sm:$0xff] }
 0xdea   :  { %5285 = vmatprep.subr.bf16.mxu0 %v5401_v3 }
 0xdf0   :  { %4869 = vmatmul.mubr.msk.f32.vlgmr.msra.gmra.mrb[22].mxu0 %vm93_vm0, %v5900_v35  ;;  %v2742_v35 = vmul.f32 %v2738_v26, %v5700_v5  ;;  %v5374_v5 = vld [vmem:[%s6581_s16] sm:$0xff]  ;;  %v3508_v26 = vld [vmem:[%s6565_s17 + $0x30] sm:$0xff] }
 0xdf1   :  { %5287 = vmatpush3.bf16.msra.mxu0 %v6015_v29  ;;  %4908 = vmatprep.mubr.msk.f32.mxu0 %vm5400_vm1, %v5399_v2  ;;  %v5331_v34 = vpack.c.bf16 %v3509_v31, %v3508_v26 }
 0xdf2   :  { %5288 = vmatprep.subr.bf16.mxu0 %v5401_v3 }
 0xdf5   :  { %5290 = vmatpush3.bf16.msra.mxu0 %v6026_v37 }
 0xdf6   :  { %5291 = vmatprep.subr.bf16.mxu0 %v5401_v3 }
 0xdf9   :  { %5293 = vmatpush3.bf16.msra.mxu0 %v6038_v41 }
 0xdfa   :  { %5294 = vmatprep.subr.bf16.mxu0 %v5401_v3 }
 0xdfd   :  { %5296 = vmatpush3.bf16.msra.mxu0 %v6048_v48 }
 0xdfe   :  { %5297 = vmatprep.subr.bf16.mxu0 %v5401_v3 }
 0xe01   :  { %5299 = vmatpush3.bf16.msra.mxu0 %v6058_v51  ;;  %v4044_v51 = vld [vmem:[%s6563_s15 + $0x10] sm:$0xff] }
 0xe02   :  { %5300 = vmatprep.subr.bf16.mxu0 %v5401_v3 }
 0xe05   :  { %5302 = vmatpush3.bf16.msra.mxu0 %v6068_v56  ;;  %v4045_v56 = vld [vmem:[%s6563_s15 + $0x18] sm:$0xff] }
 0xe06   :  { %5303 = vmatprep.subr.bf16.mxu0 %v5401_v3 }
 0xe09   :  { %5305 = vmatpush3.bf16.msra.mxu0 %v6078_v61  ;;  %v5313_v61 = vpack.c.bf16 %v4045_v56, %v4044_v51 }
 0xe0a   :  { %5306 = vmatprep.subr.bf16.mxu0 %v5401_v3 }
 0xe0d   :  { %5308 = vmatpush3.bf16.msra.mxu0 %v6088_v8  ;;  %v4042_v8 = vld [vmem:[%s6586_s13] ss:$0 sm:$0xff] }
 0xe10   :  { %4909 = vmatmul.mubr.f32.vlgmr.msra.gmra.mrb[22].mxu0 %v2742_v35  ;;  %v3815_v35 = vld [vmem:[%s6567_s19 + $0x8] sm:$0xff] }
 0xee3   :  { %v2809_v46 = vpop.f32.mrb[22].mxu0 }
 0xee4   :  { %v5340_v50 = vadd.f32 %v2809_v46, %v6099_v14  ;;  %v4910_v52 = vpop.f32.mrb[23].mxu0  ;;  %v5334_v46 = vpack.c.bf16 %v3815_v35, %v3814_v43 }
 0xee6   :  { %4912 = vmatpush3.msra.mxu1 %v5340_v50  ;;  %v3817_v50 = vld [vmem:[%s6567_s19 + $0x18] sm:$0xff] }
 0xee7   :  { %4914 = vmatmul.mubr.msk.f32.vlgmr.msra.gmra.mrb[24].mxu1 %vm93_vm0, %v6105_v12  ;;  %4916 = vmatprep.subr.mxu1 %v5399_v2 }
 0xee8   :  { %4917 = vmatpush3.msra.mxu1 %v2885_v55  ;;  %4918 = vmatprep.mubr.msk.f32.mxu1 %vm5400_vm1, %v5399_v2 }
 0xee9   :  { %5309 = vmatprep.subr.bf16.mxu1 %v5401_v3 }
 0xeeb   :  { %4919 = vmatmul.mubr.msk.f32.vlgmr.msra.gmra.mrb[26].mxu1 %vm93_vm0, %v5374_v5 }
 0xeec   :  { %4925 = vmatprep.mubr.msk.f32.mxu1 %vm5400_vm1, %v5399_v2  ;;  %5311 = vmatpush3.bf16.msra.mxu1 %v5310_v6 }
 0xeed   :  { %5312 = vmatprep.subr.bf16.mxu1 %v5401_v3 }
 0xfba   :  { %v6414_v11 = vpop.f32.mrb[24].mxu1 }
 0xfbb   :  { %v4915_v29 = vpop.f32.mrb[25].mxu1 }
 0xfbe   :  { %v2952_v37 = vpop.f32.mrb[26].mxu1 }
 0xfbf   :  { %v2953_v41 = vadd.f32 %v2952_v37, %v2885_v55  ;;  %v4920_v48 = vpop.f32.mrb[27].mxu1  ;;  %v4063_v55 = vld [vmem:[%s6566_s18] ss:$0 sm:$0xff] }
 0xfc1   :  { %4926 = vmatmul.mubr.msk.f32.vlgmr.msra.gmra.mrb[28].mxu1 %vm176_vm2, %v2953_v41 }
 0xfc2   :  { %4932 = vmatprep.mubr.msk.f32.mxu1 %vm5400_vm1, %v5399_v2  ;;  %5314 = vmatpush3.bf16.msra.mxu1 %v5313_v61 }
 0xfc3   :  { %4935 = vmatprep.subr.mxu1 %v5399_v2 }
0x1094   :  { %v3034_v14 = vpop.f32.mrb[28].mxu1 }
0x1095   :  { %v3035_v19 = vadd.f32 %v4042_v8, %v3034_v14  ;;  %v4927_v20 = vpop.f32.mrb[29].mxu1 }
0x1097   :  { %v3038_v23 = vmax.f32 %v3035_v19, 0.0 }
0x1099   :  { %4933 = vmatmul.mubr.msk.f32.vlgmr.msra.gmra.mrb[30].mxu1 %vm176_vm2, %v3038_v23 }
0x109a   :  { %4937 = vmatprep.mubr.msk.f32.mxu1 %vm5400_vm1, %v5399_v2 }
0x116c   :  { %v3119_v28 = vpop.f32.mrb[30].mxu1 }
0x116d   :  { %v3120_v33 = vadd.f32 %v4047_v25, %v3119_v28  ;;  %v4934_v38 = vpop.f32.mrb[31].mxu1 }
0x116f   :  { %4936 = vmatpush3.msra.mxu1 %v3120_v33 }
0x1170   :  { %4938 = vmatmul.mubr.msk.f32.vlgmr.msra.gmra.mrb[32].mxu1 %vm93_vm0, %v6105_v12  ;;  %4940 = vmatprep.subr.mxu1 %v5399_v2 }
0x1171   :  { %4941 = vmatpush3.msra.mxu1 %v3120_v33  ;;  %4942 = vmatprep.mubr.msk.f32.mxu1 %vm5400_vm1, %v5399_v2 }
0x1172   :  { %5315 = vmatprep.subr.bf16.mxu1 %v5401_v3 }
0x1174   :  { %4943 = vmatmul.mubr.msk.f32.vlgmr.msra.gmra.mrb[34].mxu1 %vm93_vm0, %v5374_v5 }
0x1175   :  { %4949 = vmatprep.mubr.msk.f32.mxu1 %vm5400_vm1, %v5399_v2  ;;  %5317 = vmatpush3.bf16.msra.mxu1 %v5316_v45 }
0x1176   :  { %5318 = vmatprep.subr.bf16.mxu1 %v5401_v3 }
0x1243   :  { %v3189_v49 = vpop.f32.mrb[32].mxu1 }
0x1244   :  { %v4939_v36 = vpop.f32.mrb[33].mxu1 }
0x1247   :  { %v3259_v53 = vpop.f32.mrb[34].mxu1 }
0x1248   :  { %v3260_v54 = vadd.f32 %v3259_v53, %v3120_v33  ;;  %v4944_v57 = vpop.f32.mrb[35].mxu1 }
0x124a   :  { %4950 = vmatmul.mubr.msk.f32.vlgmr.msra.gmra.mrb[36].mxu1 %vm176_vm2, %v3260_v54 }
0x124b   :  { %4956 = vmatprep.mubr.msk.f32.mxu1 %vm5400_vm1, %v5399_v2  ;;  %5320 = vmatpush3.bf16.msra.mxu1 %v5319_v4 }
0x124c   :  { %4959 = vmatprep.subr.mxu1 %v5399_v2 }
0x131d   :  { %v3343_v24 = vpop.f32.mrb[36].mxu1 }
0x131e   :  { %v3344_v1 = vadd.f32 %v4054_v47, %v3343_v24  ;;  %v4951_v16 = vpop.f32.mrb[37].mxu1 }
0x1320   :  { %v3347_v18 = vmax.f32 %v3344_v1, 0.0 }
0x1322   :  { %4957 = vmatmul.mubr.msk.f32.vlgmr.msra.gmra.mrb[38].mxu1 %vm176_vm2, %v3347_v18 }
0x1323   :  { %4961 = vmatprep.mubr.msk.f32.mxu1 %vm5400_vm1, %v5399_v2 }
0x13f5   :  { %v3428_v39 = vpop.f32.mrb[38].mxu1 }
0x13f6   :  { %v3429_v42 = vadd.f32 %v4059_v21, %v3428_v39  ;;  %v4958_v0 = vpop.f32.mrb[39].mxu1 }
0x13f8   :  { %4960 = vmatpush3.msra.mxu1 %v3429_v42 }
0x13f9   :  { %4962 = vmatmul.mubr.msk.f32.vlgmr.msra.gmra.mrb[40].mxu1 %vm93_vm0, %v6105_v12  ;;  %5321 = vmatprep.subr.bf16.mxu1 %v5401_v3  ;;  %v3506_v12 = vld [vmem:[%s6565_s17 + $0x20] sm:$0xff] }
0x13fa   :  { %5323 = vmatpush3.bf16.msra.mxu1 %v5322_v9  ;;  %4968 = vmatprep.mubr.msk.f32.mxu1 %vm5400_vm1, %v5399_v2  ;;  %v5328_v13 = vpack.c.bf16 %v3507_v10, %v3506_v12 }
0x13fb   :  { %5324 = vmatprep.subr.bf16.mxu1 %v5401_v3 }
0x13fd   :  { %4969 = vmatmul.mubr.msk.f32.vlgmr.msra.gmra.mrb[42].mxu1 %vm176_vm2, %v3189_v49 }
0x13fe   :  { %5326 = vmatpush3.bf16.msra.mxu1 %v5325_v7  ;;  %4975 = vmatprep.mubr.msk.f32.mxu1 %vm5400_vm1, %v5399_v2 }
0x13ff   :  { %5327 = vmatprep.subr.bf16.mxu1 %v5401_v3 }
0x14cc   :  { %v3498_v17 = vpop.f32.mrb[40].mxu1 }
0x14cd   :  { %4976 = vmatmul.mubr.msk.f32.vlgmr.msra.gmra.mrb[42].mxu1 %vm176_vm2, %v3498_v17  ;;  %v4963_v22 = vpop.f32.mrb[41].mxu1 }
0x14ce   :  { %5329 = vmatpush3.bf16.msra.mxu1 %v5328_v13  ;;  %4982 = vmatprep.mubr.msk.f32.mxu1 %vm5400_vm1, %v5399_v2 }
0x14cf   :  { %5330 = vmatprep.subr.bf16.mxu1 %v5401_v3 }
0x14d5   :  { %4983 = vmatmul.mubr.msk.f32.vlgmr.msra.gmra.mrb[42].mxu1 %vm176_vm2, %v6124_v32  ;;  %v3816_v32 = vld [vmem:[%s6567_s19 + $0x10] sm:$0xff]  ;;  %s5375_s19 = scalar_lea.vmem %s3908_s2, 32 }
0x14d6   :  { %5332 = vmatpush3.bf16.msra.mxu1 %v5331_v34  ;;  %4989 = vmatprep.mubr.msk.f32.mxu1 %vm5400_vm1, %v5399_v2  ;;  %v5337_v52 = vpack.c.bf16 %v3817_v50, %v3816_v32  ;;  %p5376_p0 = scmp.ne.s32.totalorder %s3908_s2, %s5375_s19  ;;  %p5381_p2 = scmp.lt.s32.totalorder %s5375_s19, %s5375_s19 }
0x14d7   :  { %5333 = vmatprep.subr.bf16.mxu1 %v5401_v3 }
0x14d8   :  { %p5382_p3 = por %p5381_p2, %p5380_p1 }
0x14da   :  { %p5383_p4 = pnand %p5382_p3, %p5376_p0 }
0x14dd   :  { %4990 = vmatmul.mubr.msk.f32.vlgmr.msra.gmra.mrb[42].mxu1 %vm176_vm2, %v6414_v11 }
0x14de   :  { %5335 = vmatpush3.bf16.msra.mxu1 %v5334_v46  ;;  %5000 = vmatprep.mubr.msk.f32.mxu1 %vm5400_vm1, %v5399_v2 }
0x14df   :  { %5336 = vmatprep.subr.bf16.mxu1 %v5401_v3  ;;  %v4067_v3 = vld [vmem:[%s6568_s20] ss:$0 sm:$0xff] }
0x14e2   :  { %5338 = vmatpush3.bf16.msra.mxu1 %v5337_v52 }
0x15b0   :  { %v3808_v5 = vpop.f32.mrb[42].mxu1 }
0x15b1   :  { %v5341_v58 = vadd.f32 %v4063_v55, %v3808_v5  ;;  %v4991_v62 = vpop.f32.mrb[43].mxu1 }
0x15b3   :  { %v3813_v2 = vmax.f32 %v5341_v58, 0.0 }
0x15b5   :  { %5001 = vmatmul.mubr.msk.f32.vlgmr.msra.gmra.mrb[44].mxu1 %vm3825_vm3, %v3813_v2 }
0x1688   :  { %v3895_v6 = vpop.f32.mrb[44].mxu1 }
0x1689   :  { %v3896_v11 = vadd.f32 %v4067_v3, %v3895_v6  ;;  %v5002_v29 = vpop.f32.mrb[45].mxu1 }
0x168b   :  { %3900 = vst.msk [vmem:[#allocation2] sm:$0x3] %vm3899_vm4, %v3896_v11 }
0x168c   :  { %5386 = shalt.err (!%p5383_p4)
}
0x168d   :  { %s5387_s26 = scalar_lea.hbm %s6569_s21, 32 }
0x168e   :  { %p5388_p5 = scmp.ne.s32.totalorder %s6569_s21, %s5387_s26  ;;  %p5391_p6 = scmp.lt.u32.totalorder %s5387_s26, %s6569_s21 }
0x1690   :  { %p5393_p7 = pnand %p5391_p6, %p5388_p5 }
0x1692   :  { %5396 = shalt.err (!%p5393_p7)
}
0x1693   :  { %3910 = dma.vmem_to_hbm [thread:$0]  %s3908_s2, 32, %s6569_s21, [#allocation3]  }
0x1694   :  { %5397 = dma.done.wait [#allocation3], 32  }
0x1695   :  { %5398 = vsyncadd [#allocation3], 4294967264 }
0x1696   :  { %3914 = vsyncpa [#allocation3], 1 }

</bundles_post_ra>
